<compile_context>
chip_gen: v7x
topology: tpu7x:2x2x1
jax: 0.10.0
libtpu: 0.0.40
codegen_flags: <defaults>
</compile_context>

<pallas_src>
import math

import numpy as np
import jax
import jax.numpy as jnp
from jax.experimental import pallas as pl
from jax.experimental.pallas import tpu as pltpu  # noqa: F401  (TPU backend assumed)

# ---------------- configuration (small, consistent with the module) ----------------
B = 2                 # batch (notes)
CHUNKS = (2, 1)       # chunks per note
C = sum(CHUNKS)       # total chunks fed through the backbone
S = 8                 # sequence length per chunk
H = 32                # bert hidden size
V = 64                # vocab size
T = 16                # tabular size
N_LAYERS = 2          # synthetic BERT depth
N_HEADS = 2           # BERT self-attention heads
HD = H // N_HEADS
FFN = 4 * H
LN_EPS = 1e-12
NEG = -1e9
CS = C * S            # 24
BS = B * S            # 16
SLAB_W = 128          # slab lane width


# ------------------------------ slab row layout (static) ----------------------------
def _round8(n):
    return ((n + 7) // 8) * 8


def _make_layout():
    off, r = {}, 0

    def alloc(name, rows):
        nonlocal r
        off[name] = r
        r += _round8(rows)

    alloc('word', V)        # word embedding table           [64, 32]
    alloc('pos', CS)        # positional embedding tiled     [24, 32]
    alloc('type', 2)        # token-type embedding           [2, 32]
    alloc('eln', 2)         # embedding LN gamma / beta      [2, 32]
    alloc('blk', CS)        # block-diagonal chunk mask      [24, 24]
    alloc('pool', BS)       # chunk scatter-mean matrix      [16, 24]
    alloc('pe', BS)         # sinusoidal PE tiled over batch [16, 32]
    alloc('xm', B)          # cross-attn batch mask          [2, 16]
    for l in range(N_LAYERS):
        alloc(f'wqkv{l}', H)    # [32, 96]  (Q scale folded in)
        alloc(f'wo{l}', H)      # [32, 32]
        alloc(f'w1{l}', H)      # [32, 128]
        alloc(f'w2{l}', FFN)    # [128, 32]
        alloc(f'lb{l}', 8)      # per-layer bias / LN block   [8, 128]
    alloc('wqn', T)         # [wq_t*scale | wv_n@wo_n]       [16, 48]
    alloc('wkv', H)         # [wk_t | wv_t]                  [32, 32]
    alloc('wot', T)         # out-proj of tab<-nlp attention [16, 16]
    alloc('cb', 5)          # cross bias block (+ fc row)    [5, 128]
    off['_rows'] = _round8(r)
    return off


LAYOUT = _make_layout()


# --------------------------------- small helpers -------------------------------------
def layernorm(x, g, b, eps=LN_EPS):
    mu = jnp.mean(x, axis=-1, keepdims=True)
    var = jnp.mean((x - mu) ** 2, axis=-1, keepdims=True)
    return (x - mu) * jax.lax.rsqrt(var + eps) * g + b


def _softmax_rows(s):
    # in-kernel only: denominator reciprocal goes to the (otherwise idle) EUP slot
    m = jnp.max(s, axis=-1, keepdims=True)
    p = jnp.exp(s - m)
    return p * pl.reciprocal(jnp.sum(p, axis=-1, keepdims=True), approx=True)


def sinusoidal_pe(seq_len, dim):
    # fairseq-style: half sin, half cos
    half = dim // 2
    freqs = jnp.exp(jnp.arange(half, dtype=jnp.float32) * (-math.log(10000.0) / (half - 1)))
    pos = jnp.arange(seq_len, dtype=jnp.float32)[:, None]
    return jnp.concatenate([jnp.sin(pos * freqs), jnp.cos(pos * freqs)], axis=-1)  # [S, dim]


# ======================= fused Pallas kernel: whole forward =======================
def fused_forward_kernel(ids_ref, tids_ref, amask_ref, tab_ref, slab_ref, o_ref):
    f32 = jnp.float32
    W = slab_ref
    L = LAYOUT

    # ---- BERT embeddings: one-hot word matmul + tiled positional + type select ----
    onehot = (ids_ref[...] ==
              jax.lax.broadcasted_iota(jnp.int32, (CS, V), 1)).astype(f32)        # [24, 64]
    emb = jnp.dot(onehot, W[L['word']:L['word'] + V, 0:H], preferred_element_type=f32)
    emb = emb + W[L['pos']:L['pos'] + CS, 0:H]
    type_blk = W[L['type']:L['type'] + 8, 0:H]          # aligned 8-row block, value-slice rows
    emb = emb + jnp.where(tids_ref[...] == 0, type_blk[0:1, :], type_blk[1:2, :])
    eln_blk = W[L['eln']:L['eln'] + 8, 0:H]
    x = layernorm(emb, eln_blk[0:1, :], eln_blk[1:2, :])                           # [24, 32]

    # ---- additive attention mask: static block-diag (from slab) + dynamic key padding ----
    key_neg = (amask_ref[...] - 1.0) * 1e9                                         # [1, 24]
    mask = W[L['blk']:L['blk'] + CS, 0:CS] + key_neg                               # [24, 24]

    # ---- BERT encoder layers, chunks flattened on sublanes, fused QKV / out-proj ----
    for l in range(N_LAYERS):                                                      # static
        wqkv = W[L[f'wqkv{l}']:L[f'wqkv{l}'] + H, 0:3 * H]
        wo = W[L[f'wo{l}']:L[f'wo{l}'] + H, 0:H]
        w1 = W[L[f'w1{l}']:L[f'w1{l}'] + H, 0:FFN]
        w2 = W[L[f'w2{l}']:L[f'w2{l}'] + FFN, 0:H]
        bb = W[L[f'lb{l}']:L[f'lb{l}'] + 8, :]                                     # [8, 128]
        bqkv = bb[0:1, 0:3 * H]
        bo = bb[1:2, 0:H]
        ln1g, ln1b = bb[2:3, 0:H], bb[3:4, 0:H]
        b1 = bb[4:5, 0:FFN]
        b2 = bb[5:6, 0:H]
        ln2g, ln2b = bb[6:7, 0:H], bb[7:8, 0:H]

        qkv = jnp.dot(x, wqkv, preferred_element_type=f32) + bqkv                  # [24, 96]
        heads = []
        for h in range(N_HEADS):                                                   # static
            q = qkv[:, h * HD:(h + 1) * HD]                    # scale already folded in
            k = qkv[:, H + h * HD:H + (h + 1) * HD]
            v = qkv[:, 2 * H + h * HD:2 * H + (h + 1) * HD]
            s = jnp.dot(q, k.T, preferred_element_type=f32) + mask                 # [24, 24]
            heads.append(jnp.dot(_softmax_rows(s), v, preferred_element_type=f32))
        attn = jnp.dot(jnp.concatenate(heads, axis=-1), wo,
                       preferred_element_type=f32) + bo                            # [24, 32]
        h1 = layernorm(x + attn, ln1g, ln1b)
        ff = jax.nn.gelu(jnp.dot(h1, w1, preferred_element_type=f32) + b1)
        ff = jnp.dot(ff, w2, preferred_element_type=f32) + b2
        x = layernorm(h1 + ff, ln2g, ln2b)

    # ---- chunk scatter-mean pooling (one MXU push) + sinusoidal PE add ----
    nlp = (jnp.dot(W[L['pool']:L['pool'] + BS, 0:CS], x, preferred_element_type=f32)
           + W[L['pe']:L['pe'] + BS, 0:H])                                         # [16, 32]

    # ---- cross-modal attention, fused projections ----
    tab = tab_ref[...]                                                             # [2, 16]
    cb = W[L['cb']:L['cb'] + 8, :]                                                 # [8, 128]

    # tab @ [wq_t*scale | wn]: nlp<-tab attention has a single key token, so its
    # softmax == 1 and the block collapses to out_proj(v_proj(tab)) == tab @ wn + bn.
    qn = jnp.dot(tab, W[L['wqn']:L['wqn'] + T, 0:T + H],
                 preferred_element_type=f32) + cb[0:1, 0:T + H]                    # [2, 48]
    q_t = qn[:, 0:T]
    tab_to_nlp = qn[:, T:T + H]

    # nlp @ [wk_t | wv_t]
    kv = jnp.dot(nlp, W[L['wkv']:L['wkv'] + H, 0:2 * T],
                 preferred_element_type=f32) + cb[1:2, 0:2 * T]                    # [16, 32]
    k_t, v_t = kv[:, 0:T], kv[:, T:2 * T]

    xm_blk = W[L['xm']:L['xm'] + 8, 0:BS]
    s = jnp.dot(q_t, k_t.T, preferred_element_type=f32) + xm_blk[0:B, :]           # [2, 16]
    ctx = jnp.dot(_softmax_rows(s), v_t, preferred_element_type=f32)               # [2, 16]
    nlp_to_tab = jnp.dot(ctx, W[L['wot']:L['wot'] + T, 0:T],
                         preferred_element_type=f32) + cb[2:3, 0:T]                # [2, 16]

    # fc over concat([tab_to_nlp, nlp_to_tab]) as multiply + lane reduce, then sigmoid
    xcat = jnp.concatenate([tab_to_nlp, nlp_to_tab], axis=-1)                      # [2, 48]
    logit = jnp.sum(xcat * cb[3:4, 0:H + T], axis=-1, keepdims=True) + cb[4:5, 0:1]
    o_ref[...] = jax.nn.sigmoid(logit)


# ------------------------------- parameters (synthetic) -----------------------------
def init_params(seed=0):
    kit = iter(jax.random.split(jax.random.PRNGKey(seed), 64))

    def nrm(shape, scale=0.02):
        return scale * jax.random.normal(next(kit), shape, jnp.float32)

    params = {
        'word_emb': nrm((V, H)),
        'pos_emb': nrm((S, H)),
        'type_emb': nrm((2, H)),
        'emb_ln_g': jnp.ones((1, H), jnp.float32),
        'emb_ln_b': jnp.zeros((1, H), jnp.float32),
        'layers': [],
    }
    for _ in range(N_LAYERS):
        params['layers'].append({
            'wq': nrm((H, H)), 'bq': nrm((1, H)),
            'wk': nrm((H, H)), 'bk': nrm((1, H)),
            'wv': nrm((H, H)), 'bv': nrm((1, H)),
            'wo': nrm((H, H)), 'bo': nrm((1, H)),
            'ln1g': jnp.ones((1, H), jnp.float32), 'ln1b': jnp.zeros((1, H), jnp.float32),
            'w1': nrm((H, FFN)), 'b1': nrm((1, FFN)),
            'w2': nrm((FFN, H)), 'b2': nrm((1, H)),
            'ln2g': jnp.ones((1, H), jnp.float32), 'ln2b': jnp.zeros((1, H), jnp.float32),
        })
    params['cross'] = {
        # trans_nlp_with_tab (only v/out projections matter: single-key softmax == 1)
        'wv_n': nrm((T, H)), 'bv_n': nrm((1, H)),
        'wo_n': nrm((H, H)), 'bo_n': nrm((1, H)),
        # trans_tab_with_nlp
        'wq_t': nrm((T, T)), 'bq_t': nrm((1, T)),
        'wk_t': nrm((H, T)), 'bk_t': nrm((1, T)),
        'wv_t': nrm((H, T)), 'bv_t': nrm((1, T)),
        'wo_t': nrm((T, T)), 'bo_t': nrm((1, T)),
        # fc : Linear(H + T, 1), split into nlp-part and tab-part rows
        'wfc_nlp': nrm((H, 1)), 'wfc_tab': nrm((T, 1)), 'bfc': nrm((1, 1)),
    }
    return params


# ---------------------------- host-side slab packing (done ONCE) ---------------------
def pack_slab(params, chunks):
    L = LAYOUT
    slab = np.zeros((L['_rows'], SLAB_W), np.float32)

    def put(name, arr, row=0, col=0):
        a = np.asarray(arr, np.float32)
        slab[L[name] + row:L[name] + row + a.shape[0], col:col + a.shape[1]] = a

    put('word', params['word_emb'])
    put('pos', np.tile(np.asarray(params['pos_emb'], np.float32), (C, 1)))
    put('type', params['type_emb'])
    put('eln', np.concatenate([np.asarray(params['emb_ln_g'], np.float32),
                               np.asarray(params['emb_ln_b'], np.float32)], axis=0))

    chunk_id = np.repeat(np.arange(C), S)
    put('blk', np.where(chunk_id[:, None] == chunk_id[None, :], 0.0, NEG))

    step = np.concatenate([np.full(int(c), i) for i, c in enumerate(chunks)])
    onehot = (step[:, None] == np.arange(len(chunks))[None, :]).astype(np.float32)   # [C, B]
    pm = onehot.T / onehot.sum(axis=0)[:, None]                                       # [B, C]
    put('pool', np.kron(pm, np.eye(S, dtype=np.float32)))                             # [BS, CS]
    put('pe', np.tile(np.asarray(sinusoidal_pe(S, H), np.float32), (B, 1)))

    batch_id = np.repeat(np.arange(B), S)
    put('xm', np.where(np.arange(B)[:, None] == batch_id[None, :], 0.0, NEG))

    scale = 1.0 / math.sqrt(HD)
    for l, lp in enumerate(params['layers']):
        g = {k: np.asarray(v, np.float32) for k, v in lp.items()}
        put(f'wqkv{l}', np.concatenate([g['wq'] * scale, g['wk'], g['wv']], axis=1))
        put(f'wo{l}', g['wo'])
        put(f'w1{l}', g['w1'])
        put(f'w2{l}', g['w2'])
        put(f'lb{l}', np.concatenate([g['bq'] * scale, g['bk'], g['bv']], axis=1), row=0)
        put(f'lb{l}', g['bo'], row=1)
        put(f'lb{l}', g['ln1g'], row=2)
        put(f'lb{l}', g['ln1b'], row=3)
        put(f'lb{l}', g['b1'], row=4)
        put(f'lb{l}', g['b2'], row=5)
        put(f'lb{l}', g['ln2g'], row=6)
        put(f'lb{l}', g['ln2b'], row=7)

    cp = {k: np.asarray(v, np.float32) for k, v in params['cross'].items()}
    wn = cp['wv_n'] @ cp['wo_n']                       # [T, H]  (single-key attention fold)
    bn = cp['bv_n'] @ cp['wo_n'] + cp['bo_n']          # [1, H]
    scale_t = 1.0 / math.sqrt(T)                       # 1 head, head_dim = T
    put('wqn', np.concatenate([cp['wq_t'] * scale_t, wn], axis=1))
    put('wkv', np.concatenate([cp['wk_t'], cp['wv_t']], axis=1))
    put('wot', cp['wo_t'])
    put('cb', np.concatenate([cp['bq_t'] * scale_t, bn], axis=1), row=0)
    put('cb', np.concatenate([cp['bk_t'], cp['bv_t']], axis=1), row=1)
    put('cb', cp['bo_t'], row=2)
    put('cb', np.concatenate([cp['wfc_nlp'].T, cp['wfc_tab'].T], axis=1), row=3)
    put('cb', cp['bfc'], row=4)

    return jnp.asarray(slab)


# ---------------------------------- full forward ------------------------------------
@jax.jit
def forward(slab, input_ids, token_type_ids, attention_mask, tabular_x):
    ids = input_ids.reshape(CS, 1).astype(jnp.int32)
    tids = token_type_ids.reshape(CS, 1).astype(jnp.int32)
    am = attention_mask.reshape(1, CS).astype(jnp.float32)
    out = pl.pallas_call(
        fused_forward_kernel,
        out_shape=jax.ShapeDtypeStruct((B, 1), jnp.float32),
        # no grid: single invocation, everything resident in VMEM (<0.5 MiB)
    )(ids, tids, am, tabular_x.astype(jnp.float32), slab)
    return out[:, 0]                                                     # risk[:, 0] -> [B]


# ------------------------------ pure-JAX reference ----------------------------------
def _bert_layer_ref(x, mask, lp):
    neg = (mask.astype(jnp.float32) - 1.0)[:, None, :] * 1e9
    q = x @ lp['wq'] + lp['bq']
    k = x @ lp['wk'] + lp['bk']
    v = x @ lp['wv'] + lp['bv']
    attn = jnp.zeros_like(x)
    for h in range(N_HEADS):
        sl = slice(h * HD, (h + 1) * HD)
        s = jnp.einsum('cqd,ckd->cqk', q[..., sl], k[..., sl]) / math.sqrt(HD) + neg
        p = jax.nn.softmax(s, axis=-1)
        attn = attn + jnp.einsum('cqk,ckd->cqd', p, v[..., sl]) @ lp['wo'][sl, :]
    attn = attn + lp['bo']
    h1 = layernorm(x + attn, lp['ln1g'], lp['ln1b'])
    ff = jax.nn.gelu(h1 @ lp['w1'] + lp['b1']) @ lp['w2'] + lp['b2']
    return layernorm(h1 + ff, lp['ln2g'], lp['ln2b'])


def forward_ref(params, input_ids, token_type_ids, attention_mask, tabular_x, chunks):
    emb = (params['word_emb'][input_ids]
           + params['pos_emb'][None, :, :]
           + params['type_emb'][token_type_ids])
    x = layernorm(emb, params['emb_ln_g'], params['emb_ln_b'])
    for lp in params['layers']:
        x = _bert_layer_ref(x, attention_mask, lp)
    step = []
    for i, c in enumerate(chunks):
        step += [i] * int(c)
    step = jnp.array(step, jnp.int32)
    onehot = (step[:, None] == jnp.arange(len(chunks))[None, :]).astype(jnp.float32)
    pooled = jnp.einsum('cb,csh->bsh', onehot, x) / onehot.sum(0)[:, None, None]
    nlp = pooled + sinusoidal_pe(S, H)[None]
    cp = params['cross']
    tab = tabular_x
    v_n = tab @ cp['wv_n'] + cp['bv_n']
    tab_to_nlp = v_n @ cp['wo_n'] + cp['bo_n']
    q_t = tab @ cp['wq_t'] + cp['bq_t']
    k_t = nlp @ cp['wk_t'] + cp['bk_t']
    v_t = nlp @ cp['wv_t'] + cp['bv_t']
    s = jnp.einsum('bt,bst->bs', q_t, k_t) / math.sqrt(T)
    p = jax.nn.softmax(s, axis=-1)
    ctx = jnp.einsum('bs,bst->bt', p, v_t)
    nlp_to_tab = ctx @ cp['wo_t'] + cp['bo_t']
    xcat = jnp.concatenate([tab_to_nlp, nlp_to_tab], axis=-1)
    wfc = jnp.concatenate([cp['wfc_nlp'], cp['wfc_tab']], axis=0)
    logit = xcat @ wfc + cp['bfc']
    return jax.nn.sigmoid(logit)[:, 0]


# --------------------------------------- main ----------------------------------------
if __name__ == "__main__":
    params = init_params(seed=0)
    slab = pack_slab(params, CHUNKS)          # packed once; reused every forward

    kin = jax.random.split(jax.random.PRNGKey(0), 2)
    input_ids = jax.random.randint(kin[0], (C, S), 0, V, dtype=jnp.int32)
    token_type_ids = jnp.zeros((C, S), jnp.int32)
    attention_mask = jnp.ones((C, S), jnp.int32).at[0, 6:].set(0)     # padding in chunk 0
    tabular_x = jax.random.normal(kin[1], (B, T), jnp.float32)

    risk = forward(slab, input_ids, token_type_ids, attention_mask, tabular_x)
    risk = jax.block_until_ready(risk)
    assert risk.shape == (B,)

    risk_ref = forward_ref(params, input_ids, token_type_ids, attention_mask, tabular_x, CHUNKS)
    err = float(jnp.max(jnp.abs(risk - risk_ref)))
    assert err < 1.5e-3, (err, risk, risk_ref)

    print("KERNEL_OK")
</pallas_src>

<mosaic_0001>
module attributes {stable_mosaic.version = 11 : i64} {
  func.func @fused_forward_kernel(%arg0: memref<24x1xi32, #tpu.memory_space<vmem>>, %arg1: memref<24x1xi32, #tpu.memory_space<vmem>>, %arg2: memref<1x24xf32, #tpu.memory_space<vmem>>, %arg3: memref<2x16xf32, #tpu.memory_space<vmem>>, %arg4: memref<704x128xf32, #tpu.memory_space<vmem>>, %arg5: memref<2x1xf32, #tpu.memory_space<vmem>>) attributes {dimension_semantics = [], scalar_prefetch = 0 : i64, scratch_operands = 0 : i64, tpu.core_type = #tpu.core_type<tc>} {
    %c0 = arith.constant 0 : index
    %c0_0 = arith.constant 0 : index
    %0 = vector.load %arg0[%c0, %c0_0] : memref<24x1xi32, #tpu.memory_space<vmem>>, vector<24x1xi32>
    %1 = tpu.iota {dimensions = array<i32: 1>} : vector<24x64xi32>
    %2 = vector.broadcast %0 : vector<24x1xi32> to vector<24x64xi32>
    %3 = arith.cmpi eq, %2, %1 : vector<24x64xi32>
    %4 = arith.extui %3 : vector<24x64xi1> to vector<24x64xi32>
    %5 = arith.sitofp %4 : vector<24x64xi32> to vector<24x64xf32>
    %c0_1 = arith.constant 0 : index
    %c0_2 = arith.constant 0 : index
    %6 = vector.load %arg4[%c0_1, %c0_2] : memref<704x128xf32, #tpu.memory_space<vmem>>, vector<64x32xf32>
    %cst = arith.constant dense<0.000000e+00> : vector<24x32xf32>
    %7 = tpu.matmul %5, %6, %cst {dimension_numbers = #tpu.dot_dimension_numbers<[1], [0], [0], [1], [0, 0, 1, 1], [], []>} : vector<24x64xf32>, vector<64x32xf32>, vector<24x32xf32> -> vector<24x32xf32>
    %c64 = arith.constant 64 : index
    %c0_3 = arith.constant 0 : index
    %8 = vector.load %arg4[%c64, %c0_3] : memref<704x128xf32, #tpu.memory_space<vmem>>, vector<24x32xf32>
    %9 = arith.addf %7, %8 : vector<24x32xf32>
    %c88 = arith.constant 88 : index
    %c0_4 = arith.constant 0 : index
    %10 = vector.load %arg4[%c88, %c0_4] : memref<704x128xf32, #tpu.memory_space<vmem>>, vector<8x32xf32>
    %c0_5 = arith.constant 0 : index
    %c0_6 = arith.constant 0 : index
    %11 = vector.load %arg1[%c0_5, %c0_6] : memref<24x1xi32, #tpu.memory_space<vmem>>, vector<24x1xi32>
    %c0_i32 = arith.constant 0 : i32
    %12 = vector.broadcast %c0_i32 : i32 to vector<24x1xi32>
    %13 = arith.cmpi eq, %11, %12 : vector<24x1xi32>
    %14 = vector.extract_strided_slice %10 {offsets = [0, 0], sizes = [1, 32], strides = [1, 1]} : vector<8x32xf32> to vector<1x32xf32>
    %15 = vector.extract_strided_slice %10 {offsets = [1, 0], sizes = [1, 32], strides = [1, 1]} : vector<8x32xf32> to vector<1x32xf32>
    %16 = vector.shape_cast %13 : vector<24x1xi1> to vector<24x1xi1>
    %17 = vector.broadcast %16 : vector<24x1xi1> to vector<24x32xi1>
    %18 = vector.shape_cast %14 : vector<1x32xf32> to vector<1x32xf32>
    %19 = vector.broadcast %18 : vector<1x32xf32> to vector<24x32xf32>
    %20 = vector.shape_cast %15 : vector<1x32xf32> to vector<1x32xf32>
    %21 = vector.broadcast %20 : vector<1x32xf32> to vector<24x32xf32>
    %22 = arith.select %17, %19, %21 : vector<24x32xi1>, vector<24x32xf32>
    %23 = arith.addf %9, %22 : vector<24x32xf32>
    %c96 = arith.constant 96 : index
    %c0_7 = arith.constant 0 : index
    %24 = vector.load %arg4[%c96, %c0_7] : memref<704x128xf32, #tpu.memory_space<vmem>>, vector<8x32xf32>
    %25 = vector.extract_strided_slice %24 {offsets = [0, 0], sizes = [1, 32], strides = [1, 1]} : vector<8x32xf32> to vector<1x32xf32>
    %26 = vector.extract_strided_slice %24 {offsets = [1, 0], sizes = [1, 32], strides = [1, 1]} : vector<8x32xf32> to vector<1x32xf32>
    %cst_8 = arith.constant dense<0.000000e+00> : vector<24xf32>
    %27 = vector.multi_reduction <add>, %23, %cst_8 [1] : vector<24x32xf32> to vector<24xf32>
    %28 = vector.shape_cast %27 : vector<24xf32> to vector<24x1xf32>
    %cst_9 = arith.constant 3.200000e+01 : f32
    %29 = vector.broadcast %cst_9 : f32 to vector<24x1xf32>
    %30 = arith.divf %28, %29 : vector<24x1xf32>
    %31 = vector.broadcast %30 : vector<24x1xf32> to vector<24x32xf32>
    %32 = arith.subf %23, %31 : vector<24x32xf32>
    %33 = arith.mulf %32, %32 : vector<24x32xf32>
    %cst_10 = arith.constant dense<0.000000e+00> : vector<24xf32>
    %34 = vector.multi_reduction <add>, %33, %cst_10 [1] : vector<24x32xf32> to vector<24xf32>
    %35 = vector.shape_cast %34 : vector<24xf32> to vector<24x1xf32>
    %cst_11 = arith.constant 3.200000e+01 : f32
    %36 = vector.broadcast %cst_11 : f32 to vector<24x1xf32>
    %37 = arith.divf %35, %36 : vector<24x1xf32>
    %38 = vector.broadcast %30 : vector<24x1xf32> to vector<24x32xf32>
    %39 = arith.subf %23, %38 : vector<24x32xf32>
    %cst_12 = arith.constant 9.99999996E-13 : f32
    %40 = vector.broadcast %cst_12 : f32 to vector<24x1xf32>
    %41 = arith.addf %37, %40 : vector<24x1xf32>
    %42 = math.rsqrt %41 : vector<24x1xf32>
    %43 = vector.broadcast %42 : vector<24x1xf32> to vector<24x32xf32>
    %44 = arith.mulf %39, %43 : vector<24x32xf32>
    %45 = vector.broadcast %25 : vector<1x32xf32> to vector<24x32xf32>
    %46 = arith.mulf %44, %45 : vector<24x32xf32>
    %47 = vector.broadcast %26 : vector<1x32xf32> to vector<24x32xf32>
    %48 = arith.addf %46, %47 : vector<24x32xf32>
    %c0_13 = arith.constant 0 : index
    %c0_14 = arith.constant 0 : index
    %49 = vector.load %arg2[%c0_13, %c0_14] : memref<1x24xf32, #tpu.memory_space<vmem>>, vector<1x24xf32>
    %cst_15 = arith.constant 1.000000e+00 : f32
    %50 = vector.broadcast %cst_15 : f32 to vector<1x24xf32>
    %51 = arith.subf %49, %50 : vector<1x24xf32>
    %cst_16 = arith.constant 1.000000e+09 : f32
    %52 = vector.broadcast %cst_16 : f32 to vector<1x24xf32>
    %53 = arith.mulf %51, %52 : vector<1x24xf32>
    %c104 = arith.constant 104 : index
    %c0_17 = arith.constant 0 : index
    %54 = vector.load %arg4[%c104, %c0_17] : memref<704x128xf32, #tpu.memory_space<vmem>>, vector<24x24xf32>
    %55 = vector.broadcast %53 : vector<1x24xf32> to vector<24x24xf32>
    %56 = arith.addf %54, %55 : vector<24x24xf32>
    %c168 = arith.constant 168 : index
    %c0_18 = arith.constant 0 : index
    %57 = vector.load %arg4[%c168, %c0_18] : memref<704x128xf32, #tpu.memory_space<vmem>>, vector<32x96xf32>
    %c200 = arith.constant 200 : index
    %c0_19 = arith.constant 0 : index
    %58 = vector.load %arg4[%c200, %c0_19] : memref<704x128xf32, #tpu.memory_space<vmem>>, vector<32x32xf32>
    %c232 = arith.constant 232 : index
    %c0_20 = arith.constant 0 : index
    %59 = vector.load %arg4[%c232, %c0_20] : memref<704x128xf32, #tpu.memory_space<vmem>>, vector<32x128xf32>
    %c264 = arith.constant 264 : index
    %c0_21 = arith.constant 0 : index
    %60 = vector.load %arg4[%c264, %c0_21] : memref<704x128xf32, #tpu.memory_space<vmem>>, vector<128x32xf32>
    %c392 = arith.constant 392 : index
    %c0_22 = arith.constant 0 : index
    %61 = vector.load %arg4[%c392, %c0_22] : memref<704x128xf32, #tpu.memory_space<vmem>>, vector<8x128xf32>
    %62 = vector.extract_strided_slice %61 {offsets = [0, 0], sizes = [1, 96], strides = [1, 1]} : vector<8x128xf32> to vector<1x96xf32>
    %63 = vector.extract_strided_slice %61 {offsets = [1, 0], sizes = [1, 32], strides = [1, 1]} : vector<8x128xf32> to vector<1x32xf32>
    %64 = vector.extract_strided_slice %61 {offsets = [2, 0], sizes = [1, 32], strides = [1, 1]} : vector<8x128xf32> to vector<1x32xf32>
    %65 = vector.extract_strided_slice %61 {offsets = [3, 0], sizes = [1, 32], strides = [1, 1]} : vector<8x128xf32> to vector<1x32xf32>
    %66 = vector.extract_strided_slice %61 {offsets = [4, 0], sizes = [1, 128], strides = [1, 1]} : vector<8x128xf32> to vector<1x128xf32>
    %67 = vector.extract_strided_slice %61 {offsets = [5, 0], sizes = [1, 32], strides = [1, 1]} : vector<8x128xf32> to vector<1x32xf32>
    %68 = vector.extract_strided_slice %61 {offsets = [6, 0], sizes = [1, 32], strides = [1, 1]} : vector<8x128xf32> to vector<1x32xf32>
    %69 = vector.extract_strided_slice %61 {offsets = [7, 0], sizes = [1, 32], strides = [1, 1]} : vector<8x128xf32> to vector<1x32xf32>
    %cst_23 = arith.constant dense<0.000000e+00> : vector<24x96xf32>
    %70 = tpu.matmul %48, %57, %cst_23 {dimension_numbers = #tpu.dot_dimension_numbers<[1], [0], [0], [1], [0, 0, 1, 1], [], []>} : vector<24x32xf32>, vector<32x96xf32>, vector<24x96xf32> -> vector<24x96xf32>
    %71 = vector.broadcast %62 : vector<1x96xf32> to vector<24x96xf32>
    %72 = arith.addf %70, %71 : vector<24x96xf32>
    %73 = vector.extract_strided_slice %72 {offsets = [0, 0], sizes = [24, 16], strides = [1, 1]} : vector<24x96xf32> to vector<24x16xf32>
    %74 = vector.extract_strided_slice %72 {offsets = [0, 32], sizes = [24, 16], strides = [1, 1]} : vector<24x96xf32> to vector<24x16xf32>
    %75 = vector.extract_strided_slice %72 {offsets = [0, 64], sizes = [24, 16], strides = [1, 1]} : vector<24x96xf32> to vector<24x16xf32>
    %76 = tpu.transpose %74, [1, 0] : vector<24x16xf32> -> vector<16x24xf32>
    %cst_24 = arith.constant dense<0.000000e+00> : vector<24x24xf32>
    %77 = tpu.matmul %73, %76, %cst_24 {dimension_numbers = #tpu.dot_dimension_numbers<[1], [0], [0], [1], [0, 0, 1, 1], [], []>} : vector<24x16xf32>, vector<16x24xf32>, vector<24x24xf32> -> vector<24x24xf32>
    %78 = arith.addf %77, %56 : vector<24x24xf32>
    %cst_25 = arith.constant dense<0xFF800000> : vector<24xf32>
    %79 = vector.multi_reduction <maximumf>, %78, %cst_25 [1] : vector<24x24xf32> to vector<24xf32>
    %80 = vector.shape_cast %79 : vector<24xf32> to vector<24x1xf32>
    %81 = vector.broadcast %80 : vector<24x1xf32> to vector<24x24xf32>
    %82 = arith.subf %78, %81 : vector<24x24xf32>
    %83 = math.exp %82 : vector<24x24xf32>
    %cst_26 = arith.constant dense<0.000000e+00> : vector<24xf32>
    %84 = vector.multi_reduction <add>, %83, %cst_26 [1] : vector<24x24xf32> to vector<24xf32>
    %85 = vector.shape_cast %84 : vector<24xf32> to vector<24x1xf32>
    %86 = tpu.reciprocal %85 {approx = true} : vector<24x1xf32> -> vector<24x1xf32>
    %87 = vector.broadcast %86 : vector<24x1xf32> to vector<24x24xf32>
    %88 = arith.mulf %83, %87 : vector<24x24xf32>
    %cst_27 = arith.constant dense<0.000000e+00> : vector<24x16xf32>
    %89 = tpu.matmul %88, %75, %cst_27 {dimension_numbers = #tpu.dot_dimension_numbers<[1], [0], [0], [1], [0, 0, 1, 1], [], []>} : vector<24x24xf32>, vector<24x16xf32>, vector<24x16xf32> -> vector<24x16xf32>
    %90 = vector.extract_strided_slice %72 {offsets = [0, 16], sizes = [24, 16], strides = [1, 1]} : vector<24x96xf32> to vector<24x16xf32>
    %91 = vector.extract_strided_slice %72 {offsets = [0, 48], sizes = [24, 16], strides = [1, 1]} : vector<24x96xf32> to vector<24x16xf32>
    %92 = vector.extract_strided_slice %72 {offsets = [0, 80], sizes = [24, 16], strides = [1, 1]} : vector<24x96xf32> to vector<24x16xf32>
    %93 = tpu.transpose %91, [1, 0] : vector<24x16xf32> -> vector<16x24xf32>
    %cst_28 = arith.constant dense<0.000000e+00> : vector<24x24xf32>
    %94 = tpu.matmul %90, %93, %cst_28 {dimension_numbers = #tpu.dot_dimension_numbers<[1], [0], [0], [1], [0, 0, 1, 1], [], []>} : vector<24x16xf32>, vector<16x24xf32>, vector<24x24xf32> -> vector<24x24xf32>
    %95 = arith.addf %94, %56 : vector<24x24xf32>
    %cst_29 = arith.constant dense<0xFF800000> : vector<24xf32>
    %96 = vector.multi_reduction <maximumf>, %95, %cst_29 [1] : vector<24x24xf32> to vector<24xf32>
    %97 = vector.shape_cast %96 : vector<24xf32> to vector<24x1xf32>
    %98 = vector.broadcast %97 : vector<24x1xf32> to vector<24x24xf32>
    %99 = arith.subf %95, %98 : vector<24x24xf32>
    %100 = math.exp %99 : vector<24x24xf32>
    %cst_30 = arith.constant dense<0.000000e+00> : vector<24xf32>
    %101 = vector.multi_reduction <add>, %100, %cst_30 [1] : vector<24x24xf32> to vector<24xf32>
    %102 = vector.shape_cast %101 : vector<24xf32> to vector<24x1xf32>
    %103 = tpu.reciprocal %102 {approx = true} : vector<24x1xf32> -> vector<24x1xf32>
    %104 = vector.broadcast %103 : vector<24x1xf32> to vector<24x24xf32>
    %105 = arith.mulf %100, %104 : vector<24x24xf32>
    %cst_31 = arith.constant dense<0.000000e+00> : vector<24x16xf32>
    %106 = tpu.matmul %105, %92, %cst_31 {dimension_numbers = #tpu.dot_dimension_numbers<[1], [0], [0], [1], [0, 0, 1, 1], [], []>} : vector<24x24xf32>, vector<24x16xf32>, vector<24x16xf32> -> vector<24x16xf32>
    %107 = tpu.concatenate %89, %106 in 1 : vector<24x16xf32>, vector<24x16xf32> -> vector<24x32xf32>
    %cst_32 = arith.constant dense<0.000000e+00> : vector<24x32xf32>
    %108 = tpu.matmul %107, %58, %cst_32 {dimension_numbers = #tpu.dot_dimension_numbers<[1], [0], [0], [1], [0, 0, 1, 1], [], []>} : vector<24x32xf32>, vector<32x32xf32>, vector<24x32xf32> -> vector<24x32xf32>
    %109 = vector.broadcast %63 : vector<1x32xf32> to vector<24x32xf32>
    %110 = arith.addf %108, %109 : vector<24x32xf32>
    %111 = arith.addf %48, %110 : vector<24x32xf32>
    %cst_33 = arith.constant dense<0.000000e+00> : vector<24xf32>
    %112 = vector.multi_reduction <add>, %111, %cst_33 [1] : vector<24x32xf32> to vector<24xf32>
    %113 = vector.shape_cast %112 : vector<24xf32> to vector<24x1xf32>
    %cst_34 = arith.constant 3.200000e+01 : f32
    %114 = vector.broadcast %cst_34 : f32 to vector<24x1xf32>
    %115 = arith.divf %113, %114 : vector<24x1xf32>
    %116 = vector.broadcast %115 : vector<24x1xf32> to vector<24x32xf32>
    %117 = arith.subf %111, %116 : vector<24x32xf32>
    %118 = arith.mulf %117, %117 : vector<24x32xf32>
    %cst_35 = arith.constant dense<0.000000e+00> : vector<24xf32>
    %119 = vector.multi_reduction <add>, %118, %cst_35 [1] : vector<24x32xf32> to vector<24xf32>
    %120 = vector.shape_cast %119 : vector<24xf32> to vector<24x1xf32>
    %cst_36 = arith.constant 3.200000e+01 : f32
    %121 = vector.broadcast %cst_36 : f32 to vector<24x1xf32>
    %122 = arith.divf %120, %121 : vector<24x1xf32>
    %123 = vector.broadcast %115 : vector<24x1xf32> to vector<24x32xf32>
    %124 = arith.subf %111, %123 : vector<24x32xf32>
    %cst_37 = arith.constant 9.99999996E-13 : f32
    %125 = vector.broadcast %cst_37 : f32 to vector<24x1xf32>
    %126 = arith.addf %122, %125 : vector<24x1xf32>
    %127 = math.rsqrt %126 : vector<24x1xf32>
    %128 = vector.broadcast %127 : vector<24x1xf32> to vector<24x32xf32>
    %129 = arith.mulf %124, %128 : vector<24x32xf32>
    %130 = vector.broadcast %64 : vector<1x32xf32> to vector<24x32xf32>
    %131 = arith.mulf %129, %130 : vector<24x32xf32>
    %132 = vector.broadcast %65 : vector<1x32xf32> to vector<24x32xf32>
    %133 = arith.addf %131, %132 : vector<24x32xf32>
    %cst_38 = arith.constant dense<0.000000e+00> : vector<24x128xf32>
    %134 = tpu.matmul %133, %59, %cst_38 {dimension_numbers = #tpu.dot_dimension_numbers<[1], [0], [0], [1], [0, 0, 1, 1], [], []>} : vector<24x32xf32>, vector<32x128xf32>, vector<24x128xf32> -> vector<24x128xf32>
    %135 = vector.broadcast %66 : vector<1x128xf32> to vector<24x128xf32>
    %136 = arith.addf %134, %135 : vector<24x128xf32>
    %137 = arith.mulf %136, %136 : vector<24x128xf32>
    %138 = arith.mulf %136, %137 : vector<24x128xf32>
    %cst_39 = arith.constant 4.471500e-02 : f32
    %139 = vector.broadcast %cst_39 : f32 to vector<24x128xf32>
    %140 = arith.mulf %139, %138 : vector<24x128xf32>
    %141 = arith.addf %136, %140 : vector<24x128xf32>
    %cst_40 = arith.constant 0.797884583 : f32
    %142 = vector.broadcast %cst_40 : f32 to vector<24x128xf32>
    %143 = arith.mulf %142, %141 : vector<24x128xf32>
    %144 = math.tanh %143 : vector<24x128xf32>
    %cst_41 = arith.constant 1.000000e+00 : f32
    %145 = vector.broadcast %cst_41 : f32 to vector<24x128xf32>
    %146 = arith.addf %145, %144 : vector<24x128xf32>
    %cst_42 = arith.constant 5.000000e-01 : f32
    %147 = vector.broadcast %cst_42 : f32 to vector<24x128xf32>
    %148 = arith.mulf %147, %146 : vector<24x128xf32>
    %149 = arith.mulf %136, %148 : vector<24x128xf32>
    %cst_43 = arith.constant dense<0.000000e+00> : vector<24x32xf32>
    %150 = tpu.matmul %149, %60, %cst_43 {dimension_numbers = #tpu.dot_dimension_numbers<[1], [0], [0], [1], [0, 0, 1, 1], [], []>} : vector<24x128xf32>, vector<128x32xf32>, vector<24x32xf32> -> vector<24x32xf32>
    %151 = vector.broadcast %67 : vector<1x32xf32> to vector<24x32xf32>
    %152 = arith.addf %150, %151 : vector<24x32xf32>
    %153 = arith.addf %133, %152 : vector<24x32xf32>
    %cst_44 = arith.constant dense<0.000000e+00> : vector<24xf32>
    %154 = vector.multi_reduction <add>, %153, %cst_44 [1] : vector<24x32xf32> to vector<24xf32>
    %155 = vector.shape_cast %154 : vector<24xf32> to vector<24x1xf32>
    %cst_45 = arith.constant 3.200000e+01 : f32
    %156 = vector.broadcast %cst_45 : f32 to vector<24x1xf32>
    %157 = arith.divf %155, %156 : vector<24x1xf32>
    %158 = vector.broadcast %157 : vector<24x1xf32> to vector<24x32xf32>
    %159 = arith.subf %153, %158 : vector<24x32xf32>
    %160 = arith.mulf %159, %159 : vector<24x32xf32>
    %cst_46 = arith.constant dense<0.000000e+00> : vector<24xf32>
    %161 = vector.multi_reduction <add>, %160, %cst_46 [1] : vector<24x32xf32> to vector<24xf32>
    %162 = vector.shape_cast %161 : vector<24xf32> to vector<24x1xf32>
    %cst_47 = arith.constant 3.200000e+01 : f32
    %163 = vector.broadcast %cst_47 : f32 to vector<24x1xf32>
    %164 = arith.divf %162, %163 : vector<24x1xf32>
    %165 = vector.broadcast %157 : vector<24x1xf32> to vector<24x32xf32>
    %166 = arith.subf %153, %165 : vector<24x32xf32>
    %cst_48 = arith.constant 9.99999996E-13 : f32
    %167 = vector.broadcast %cst_48 : f32 to vector<24x1xf32>
    %168 = arith.addf %164, %167 : vector<24x1xf32>
    %169 = math.rsqrt %168 : vector<24x1xf32>
    %170 = vector.broadcast %169 : vector<24x1xf32> to vector<24x32xf32>
    %171 = arith.mulf %166, %170 : vector<24x32xf32>
    %172 = vector.broadcast %68 : vector<1x32xf32> to vector<24x32xf32>
    %173 = arith.mulf %171, %172 : vector<24x32xf32>
    %174 = vector.broadcast %69 : vector<1x32xf32> to vector<24x32xf32>
    %175 = arith.addf %173, %174 : vector<24x32xf32>
    %c400 = arith.constant 400 : index
    %c0_49 = arith.constant 0 : index
    %176 = vector.load %arg4[%c400, %c0_49] : memref<704x128xf32, #tpu.memory_space<vmem>>, vector<32x96xf32>
    %c432 = arith.constant 432 : index
    %c0_50 = arith.constant 0 : index
    %177 = vector.load %arg4[%c432, %c0_50] : memref<704x128xf32, #tpu.memory_space<vmem>>, vector<32x32xf32>
    %c464 = arith.constant 464 : index
    %c0_51 = arith.constant 0 : index
    %178 = vector.load %arg4[%c464, %c0_51] : memref<704x128xf32, #tpu.memory_space<vmem>>, vector<32x128xf32>
    %c496 = arith.constant 496 : index
    %c0_52 = arith.constant 0 : index
    %179 = vector.load %arg4[%c496, %c0_52] : memref<704x128xf32, #tpu.memory_space<vmem>>, vector<128x32xf32>
    %c624 = arith.constant 624 : index
    %c0_53 = arith.constant 0 : index
    %180 = vector.load %arg4[%c624, %c0_53] : memref<704x128xf32, #tpu.memory_space<vmem>>, vector<8x128xf32>
    %181 = vector.extract_strided_slice %180 {offsets = [0, 0], sizes = [1, 96], strides = [1, 1]} : vector<8x128xf32> to vector<1x96xf32>
    %182 = vector.extract_strided_slice %180 {offsets = [1, 0], sizes = [1, 32], strides = [1, 1]} : vector<8x128xf32> to vector<1x32xf32>
    %183 = vector.extract_strided_slice %180 {offsets = [2, 0], sizes = [1, 32], strides = [1, 1]} : vector<8x128xf32> to vector<1x32xf32>
    %184 = vector.extract_strided_slice %180 {offsets = [3, 0], sizes = [1, 32], strides = [1, 1]} : vector<8x128xf32> to vector<1x32xf32>
    %185 = vector.extract_strided_slice %180 {offsets = [4, 0], sizes = [1, 128], strides = [1, 1]} : vector<8x128xf32> to vector<1x128xf32>
    %186 = vector.extract_strided_slice %180 {offsets = [5, 0], sizes = [1, 32], strides = [1, 1]} : vector<8x128xf32> to vector<1x32xf32>
    %187 = vector.extract_strided_slice %180 {offsets = [6, 0], sizes = [1, 32], strides = [1, 1]} : vector<8x128xf32> to vector<1x32xf32>
    %188 = vector.extract_strided_slice %180 {offsets = [7, 0], sizes = [1, 32], strides = [1, 1]} : vector<8x128xf32> to vector<1x32xf32>
    %cst_54 = arith.constant dense<0.000000e+00> : vector<24x96xf32>
    %189 = tpu.matmul %175, %176, %cst_54 {dimension_numbers = #tpu.dot_dimension_numbers<[1], [0], [0], [1], [0, 0, 1, 1], [], []>} : vector<24x32xf32>, vector<32x96xf32>, vector<24x96xf32> -> vector<24x96xf32>
    %190 = vector.broadcast %181 : vector<1x96xf32> to vector<24x96xf32>
    %191 = arith.addf %189, %190 : vector<24x96xf32>
    %192 = vector.extract_strided_slice %191 {offsets = [0, 0], sizes = [24, 16], strides = [1, 1]} : vector<24x96xf32> to vector<24x16xf32>
    %193 = vector.extract_strided_slice %191 {offsets = [0, 32], sizes = [24, 16], strides = [1, 1]} : vector<24x96xf32> to vector<24x16xf32>
    %194 = vector.extract_strided_slice %191 {offsets = [0, 64], sizes = [24, 16], strides = [1, 1]} : vector<24x96xf32> to vector<24x16xf32>
    %195 = tpu.transpose %193, [1, 0] : vector<24x16xf32> -> vector<16x24xf32>
    %cst_55 = arith.constant dense<0.000000e+00> : vector<24x24xf32>
    %196 = tpu.matmul %192, %195, %cst_55 {dimension_numbers = #tpu.dot_dimension_numbers<[1], [0], [0], [1], [0, 0, 1, 1], [], []>} : vector<24x16xf32>, vector<16x24xf32>, vector<24x24xf32> -> vector<24x24xf32>
    %197 = arith.addf %196, %56 : vector<24x24xf32>
    %cst_56 = arith.constant dense<0xFF800000> : vector<24xf32>
    %198 = vector.multi_reduction <maximumf>, %197, %cst_56 [1] : vector<24x24xf32> to vector<24xf32>
    %199 = vector.shape_cast %198 : vector<24xf32> to vector<24x1xf32>
    %200 = vector.broadcast %199 : vector<24x1xf32> to vector<24x24xf32>
    %201 = arith.subf %197, %200 : vector<24x24xf32>
    %202 = math.exp %201 : vector<24x24xf32>
    %cst_57 = arith.constant dense<0.000000e+00> : vector<24xf32>
    %203 = vector.multi_reduction <add>, %202, %cst_57 [1] : vector<24x24xf32> to vector<24xf32>
    %204 = vector.shape_cast %203 : vector<24xf32> to vector<24x1xf32>
    %205 = tpu.reciprocal %204 {approx = true} : vector<24x1xf32> -> vector<24x1xf32>
    %206 = vector.broadcast %205 : vector<24x1xf32> to vector<24x24xf32>
    %207 = arith.mulf %202, %206 : vector<24x24xf32>
    %cst_58 = arith.constant dense<0.000000e+00> : vector<24x16xf32>
    %208 = tpu.matmul %207, %194, %cst_58 {dimension_numbers = #tpu.dot_dimension_numbers<[1], [0], [0], [1], [0, 0, 1, 1], [], []>} : vector<24x24xf32>, vector<24x16xf32>, vector<24x16xf32> -> vector<24x16xf32>
    %209 = vector.extract_strided_slice %191 {offsets = [0, 16], sizes = [24, 16], strides = [1, 1]} : vector<24x96xf32> to vector<24x16xf32>
    %210 = vector.extract_strided_slice %191 {offsets = [0, 48], sizes = [24, 16], strides = [1, 1]} : vector<24x96xf32> to vector<24x16xf32>
    %211 = vector.extract_strided_slice %191 {offsets = [0, 80], sizes = [24, 16], strides = [1, 1]} : vector<24x96xf32> to vector<24x16xf32>
    %212 = tpu.transpose %210, [1, 0] : vector<24x16xf32> -> vector<16x24xf32>
    %cst_59 = arith.constant dense<0.000000e+00> : vector<24x24xf32>
    %213 = tpu.matmul %209, %212, %cst_59 {dimension_numbers = #tpu.dot_dimension_numbers<[1], [0], [0], [1], [0, 0, 1, 1], [], []>} : vector<24x16xf32>, vector<16x24xf32>, vector<24x24xf32> -> vector<24x24xf32>
    %214 = arith.addf %213, %56 : vector<24x24xf32>
    %cst_60 = arith.constant dense<0xFF800000> : vector<24xf32>
    %215 = vector.multi_reduction <maximumf>, %214, %cst_60 [1] : vector<24x24xf32> to vector<24xf32>
    %216 = vector.shape_cast %215 : vector<24xf32> to vector<24x1xf32>
    %217 = vector.broadcast %216 : vector<24x1xf32> to vector<24x24xf32>
    %218 = arith.subf %214, %217 : vector<24x24xf32>
    %219 = math.exp %218 : vector<24x24xf32>
    %cst_61 = arith.constant dense<0.000000e+00> : vector<24xf32>
    %220 = vector.multi_reduction <add>, %219, %cst_61 [1] : vector<24x24xf32> to vector<24xf32>
    %221 = vector.shape_cast %220 : vector<24xf32> to vector<24x1xf32>
    %222 = tpu.reciprocal %221 {approx = true} : vector<24x1xf32> -> vector<24x1xf32>
    %223 = vector.broadcast %222 : vector<24x1xf32> to vector<24x24xf32>
    %224 = arith.mulf %219, %223 : vector<24x24xf32>
    %cst_62 = arith.constant dense<0.000000e+00> : vector<24x16xf32>
    %225 = tpu.matmul %224, %211, %cst_62 {dimension_numbers = #tpu.dot_dimension_numbers<[1], [0], [0], [1], [0, 0, 1, 1], [], []>} : vector<24x24xf32>, vector<24x16xf32>, vector<24x16xf32> -> vector<24x16xf32>
    %226 = tpu.concatenate %208, %225 in 1 : vector<24x16xf32>, vector<24x16xf32> -> vector<24x32xf32>
    %cst_63 = arith.constant dense<0.000000e+00> : vector<24x32xf32>
    %227 = tpu.matmul %226, %177, %cst_63 {dimension_numbers = #tpu.dot_dimension_numbers<[1], [0], [0], [1], [0, 0, 1, 1], [], []>} : vector<24x32xf32>, vector<32x32xf32>, vector<24x32xf32> -> vector<24x32xf32>
    %228 = vector.broadcast %182 : vector<1x32xf32> to vector<24x32xf32>
    %229 = arith.addf %227, %228 : vector<24x32xf32>
    %230 = arith.addf %175, %229 : vector<24x32xf32>
    %cst_64 = arith.constant dense<0.000000e+00> : vector<24xf32>
    %231 = vector.multi_reduction <add>, %230, %cst_64 [1] : vector<24x32xf32> to vector<24xf32>
    %232 = vector.shape_cast %231 : vector<24xf32> to vector<24x1xf32>
    %cst_65 = arith.constant 3.200000e+01 : f32
    %233 = vector.broadcast %cst_65 : f32 to vector<24x1xf32>
    %234 = arith.divf %232, %233 : vector<24x1xf32>
    %235 = vector.broadcast %234 : vector<24x1xf32> to vector<24x32xf32>
    %236 = arith.subf %230, %235 : vector<24x32xf32>
    %237 = arith.mulf %236, %236 : vector<24x32xf32>
    %cst_66 = arith.constant dense<0.000000e+00> : vector<24xf32>
    %238 = vector.multi_reduction <add>, %237, %cst_66 [1] : vector<24x32xf32> to vector<24xf32>
    %239 = vector.shape_cast %238 : vector<24xf32> to vector<24x1xf32>
    %cst_67 = arith.constant 3.200000e+01 : f32
    %240 = vector.broadcast %cst_67 : f32 to vector<24x1xf32>
    %241 = arith.divf %239, %240 : vector<24x1xf32>
    %242 = vector.broadcast %234 : vector<24x1xf32> to vector<24x32xf32>
    %243 = arith.subf %230, %242 : vector<24x32xf32>
    %cst_68 = arith.constant 9.99999996E-13 : f32
    %244 = vector.broadcast %cst_68 : f32 to vector<24x1xf32>
    %245 = arith.addf %241, %244 : vector<24x1xf32>
    %246 = math.rsqrt %245 : vector<24x1xf32>
    %247 = vector.broadcast %246 : vector<24x1xf32> to vector<24x32xf32>
    %248 = arith.mulf %243, %247 : vector<24x32xf32>
    %249 = vector.broadcast %183 : vector<1x32xf32> to vector<24x32xf32>
    %250 = arith.mulf %248, %249 : vector<24x32xf32>
    %251 = vector.broadcast %184 : vector<1x32xf32> to vector<24x32xf32>
    %252 = arith.addf %250, %251 : vector<24x32xf32>
    %cst_69 = arith.constant dense<0.000000e+00> : vector<24x128xf32>
    %253 = tpu.matmul %252, %178, %cst_69 {dimension_numbers = #tpu.dot_dimension_numbers<[1], [0], [0], [1], [0, 0, 1, 1], [], []>} : vector<24x32xf32>, vector<32x128xf32>, vector<24x128xf32> -> vector<24x128xf32>
    %254 = vector.broadcast %185 : vector<1x128xf32> to vector<24x128xf32>
    %255 = arith.addf %253, %254 : vector<24x128xf32>
    %256 = arith.mulf %255, %255 : vector<24x128xf32>
    %257 = arith.mulf %255, %256 : vector<24x128xf32>
    %cst_70 = arith.constant 4.471500e-02 : f32
    %258 = vector.broadcast %cst_70 : f32 to vector<24x128xf32>
    %259 = arith.mulf %258, %257 : vector<24x128xf32>
    %260 = arith.addf %255, %259 : vector<24x128xf32>
    %cst_71 = arith.constant 0.797884583 : f32
    %261 = vector.broadcast %cst_71 : f32 to vector<24x128xf32>
    %262 = arith.mulf %261, %260 : vector<24x128xf32>
    %263 = math.tanh %262 : vector<24x128xf32>
    %cst_72 = arith.constant 1.000000e+00 : f32
    %264 = vector.broadcast %cst_72 : f32 to vector<24x128xf32>
    %265 = arith.addf %264, %263 : vector<24x128xf32>
    %cst_73 = arith.constant 5.000000e-01 : f32
    %266 = vector.broadcast %cst_73 : f32 to vector<24x128xf32>
    %267 = arith.mulf %266, %265 : vector<24x128xf32>
    %268 = arith.mulf %255, %267 : vector<24x128xf32>
    %cst_74 = arith.constant dense<0.000000e+00> : vector<24x32xf32>
    %269 = tpu.matmul %268, %179, %cst_74 {dimension_numbers = #tpu.dot_dimension_numbers<[1], [0], [0], [1], [0, 0, 1, 1], [], []>} : vector<24x128xf32>, vector<128x32xf32>, vector<24x32xf32> -> vector<24x32xf32>
    %270 = vector.broadcast %186 : vector<1x32xf32> to vector<24x32xf32>
    %271 = arith.addf %269, %270 : vector<24x32xf32>
    %272 = arith.addf %252, %271 : vector<24x32xf32>
    %cst_75 = arith.constant dense<0.000000e+00> : vector<24xf32>
    %273 = vector.multi_reduction <add>, %272, %cst_75 [1] : vector<24x32xf32> to vector<24xf32>
    %274 = vector.shape_cast %273 : vector<24xf32> to vector<24x1xf32>
    %cst_76 = arith.constant 3.200000e+01 : f32
    %275 = vector.broadcast %cst_76 : f32 to vector<24x1xf32>
    %276 = arith.divf %274, %275 : vector<24x1xf32>
    %277 = vector.broadcast %276 : vector<24x1xf32> to vector<24x32xf32>
    %278 = arith.subf %272, %277 : vector<24x32xf32>
    %279 = arith.mulf %278, %278 : vector<24x32xf32>
    %cst_77 = arith.constant dense<0.000000e+00> : vector<24xf32>
    %280 = vector.multi_reduction <add>, %279, %cst_77 [1] : vector<24x32xf32> to vector<24xf32>
    %281 = vector.shape_cast %280 : vector<24xf32> to vector<24x1xf32>
    %cst_78 = arith.constant 3.200000e+01 : f32
    %282 = vector.broadcast %cst_78 : f32 to vector<24x1xf32>
    %283 = arith.divf %281, %282 : vector<24x1xf32>
    %284 = vector.broadcast %276 : vector<24x1xf32> to vector<24x32xf32>
    %285 = arith.subf %272, %284 : vector<24x32xf32>
    %cst_79 = arith.constant 9.99999996E-13 : f32
    %286 = vector.broadcast %cst_79 : f32 to vector<24x1xf32>
    %287 = arith.addf %283, %286 : vector<24x1xf32>
    %288 = math.rsqrt %287 : vector<24x1xf32>
    %289 = vector.broadcast %288 : vector<24x1xf32> to vector<24x32xf32>
    %290 = arith.mulf %285, %289 : vector<24x32xf32>
    %291 = vector.broadcast %187 : vector<1x32xf32> to vector<24x32xf32>
    %292 = arith.mulf %290, %291 : vector<24x32xf32>
    %293 = vector.broadcast %188 : vector<1x32xf32> to vector<24x32xf32>
    %294 = arith.addf %292, %293 : vector<24x32xf32>
    %c128 = arith.constant 128 : index
    %c0_80 = arith.constant 0 : index
    %295 = vector.load %arg4[%c128, %c0_80] : memref<704x128xf32, #tpu.memory_space<vmem>>, vector<16x24xf32>
    %cst_81 = arith.constant dense<0.000000e+00> : vector<16x32xf32>
    %296 = tpu.matmul %295, %294, %cst_81 {dimension_numbers = #tpu.dot_dimension_numbers<[1], [0], [0], [1], [0, 0, 1, 1], [], []>} : vector<16x24xf32>, vector<24x32xf32>, vector<16x32xf32> -> vector<16x32xf32>
    %c144 = arith.constant 144 : index
    %c0_82 = arith.constant 0 : index
    %297 = vector.load %arg4[%c144, %c0_82] : memref<704x128xf32, #tpu.memory_space<vmem>>, vector<16x32xf32>
    %298 = arith.addf %296, %297 : vector<16x32xf32>
    %c0_83 = arith.constant 0 : index
    %c0_84 = arith.constant 0 : index
    %299 = vector.load %arg3[%c0_83, %c0_84] : memref<2x16xf32, #tpu.memory_space<vmem>>, vector<2x16xf32>
    %c696 = arith.constant 696 : index
    %c0_85 = arith.constant 0 : index
    %300 = vector.load %arg4[%c696, %c0_85] : memref<704x128xf32, #tpu.memory_space<vmem>>, vector<8x128xf32>
    %c632 = arith.constant 632 : index
    %c0_86 = arith.constant 0 : index
    %301 = vector.load %arg4[%c632, %c0_86] : memref<704x128xf32, #tpu.memory_space<vmem>>, vector<16x48xf32>
    %cst_87 = arith.constant dense<0.000000e+00> : vector<2x48xf32>
    %302 = tpu.matmul %299, %301, %cst_87 {dimension_numbers = #tpu.dot_dimension_numbers<[1], [0], [0], [1], [0, 0, 1, 1], [], []>} : vector<2x16xf32>, vector<16x48xf32>, vector<2x48xf32> -> vector<2x48xf32>
    %303 = vector.extract_strided_slice %300 {offsets = [0, 0], sizes = [1, 48], strides = [1, 1]} : vector<8x128xf32> to vector<1x48xf32>
    %304 = vector.broadcast %303 : vector<1x48xf32> to vector<2x48xf32>
    %305 = arith.addf %302, %304 : vector<2x48xf32>
    %306 = vector.extract_strided_slice %305 {offsets = [0, 0], sizes = [2, 16], strides = [1, 1]} : vector<2x48xf32> to vector<2x16xf32>
    %307 = vector.extract_strided_slice %305 {offsets = [0, 16], sizes = [2, 32], strides = [1, 1]} : vector<2x48xf32> to vector<2x32xf32>
    %c648 = arith.constant 648 : index
    %c0_88 = arith.constant 0 : index
    %308 = vector.load %arg4[%c648, %c0_88] : memref<704x128xf32, #tpu.memory_space<vmem>>, vector<32x32xf32>
    %cst_89 = arith.constant dense<0.000000e+00> : vector<16x32xf32>
    %309 = tpu.matmul %298, %308, %cst_89 {dimension_numbers = #tpu.dot_dimension_numbers<[1], [0], [0], [1], [0, 0, 1, 1], [], []>} : vector<16x32xf32>, vector<32x32xf32>, vector<16x32xf32> -> vector<16x32xf32>
    %310 = vector.extract_strided_slice %300 {offsets = [1, 0], sizes = [1, 32], strides = [1, 1]} : vector<8x128xf32> to vector<1x32xf32>
    %311 = vector.broadcast %310 : vector<1x32xf32> to vector<16x32xf32>
    %312 = arith.addf %309, %311 : vector<16x32xf32>
    %313 = vector.extract_strided_slice %312 {offsets = [0, 0], sizes = [16, 16], strides = [1, 1]} : vector<16x32xf32> to vector<16x16xf32>
    %314 = vector.extract_strided_slice %312 {offsets = [0, 16], sizes = [16, 16], strides = [1, 1]} : vector<16x32xf32> to vector<16x16xf32>
    %c160 = arith.constant 160 : index
    %c0_90 = arith.constant 0 : index
    %315 = vector.load %arg4[%c160, %c0_90] : memref<704x128xf32, #tpu.memory_space<vmem>>, vector<8x16xf32>
    %316 = tpu.transpose %313, [1, 0] : vector<16x16xf32> -> vector<16x16xf32>
    %cst_91 = arith.constant dense<0.000000e+00> : vector<2x16xf32>
    %317 = tpu.matmul %306, %316, %cst_91 {dimension_numbers = #tpu.dot_dimension_numbers<[1], [0], [0], [1], [0, 0, 1, 1], [], []>} : vector<2x16xf32>, vector<16x16xf32>, vector<2x16xf32> -> vector<2x16xf32>
    %318 = vector.extract_strided_slice %315 {offsets = [0, 0], sizes = [2, 16], strides = [1, 1]} : vector<8x16xf32> to vector<2x16xf32>
    %319 = arith.addf %317, %318 : vector<2x16xf32>
    %cst_92 = arith.constant dense<0xFF800000> : vector<2xf32>
    %320 = vector.multi_reduction <maximumf>, %319, %cst_92 [1] : vector<2x16xf32> to vector<2xf32>
    %321 = vector.shape_cast %320 : vector<2xf32> to vector<2x1xf32>
    %322 = vector.broadcast %321 : vector<2x1xf32> to vector<2x16xf32>
    %323 = arith.subf %319, %322 : vector<2x16xf32>
    %324 = math.exp %323 : vector<2x16xf32>
    %cst_93 = arith.constant dense<0.000000e+00> : vector<2xf32>
    %325 = vector.multi_reduction <add>, %324, %cst_93 [1] : vector<2x16xf32> to vector<2xf32>
    %326 = vector.shape_cast %325 : vector<2xf32> to vector<2x1xf32>
    %327 = tpu.reciprocal %326 {approx = true} : vector<2x1xf32> -> vector<2x1xf32>
    %328 = vector.broadcast %327 : vector<2x1xf32> to vector<2x16xf32>
    %329 = arith.mulf %324, %328 : vector<2x16xf32>
    %cst_94 = arith.constant dense<0.000000e+00> : vector<2x16xf32>
    %330 = tpu.matmul %329, %314, %cst_94 {dimension_numbers = #tpu.dot_dimension_numbers<[1], [0], [0], [1], [0, 0, 1, 1], [], []>} : vector<2x16xf32>, vector<16x16xf32>, vector<2x16xf32> -> vector<2x16xf32>
    %c680 = arith.constant 680 : index
    %c0_95 = arith.constant 0 : index
    %331 = vector.load %arg4[%c680, %c0_95] : memref<704x128xf32, #tpu.memory_space<vmem>>, vector<16x16xf32>
    %cst_96 = arith.constant dense<0.000000e+00> : vector<2x16xf32>
    %332 = tpu.matmul %330, %331, %cst_96 {dimension_numbers = #tpu.dot_dimension_numbers<[1], [0], [0], [1], [0, 0, 1, 1], [], []>} : vector<2x16xf32>, vector<16x16xf32>, vector<2x16xf32> -> vector<2x16xf32>
    %333 = vector.extract_strided_slice %300 {offsets = [2, 0], sizes = [1, 16], strides = [1, 1]} : vector<8x128xf32> to vector<1x16xf32>
    %334 = vector.broadcast %333 : vector<1x16xf32> to vector<2x16xf32>
    %335 = arith.addf %332, %334 : vector<2x16xf32>
    %336 = tpu.concatenate %307, %335 in 1 : vector<2x32xf32>, vector<2x16xf32> -> vector<2x48xf32>
    %337 = vector.extract_strided_slice %300 {offsets = [3, 0], sizes = [1, 48], strides = [1, 1]} : vector<8x128xf32> to vector<1x48xf32>
    %338 = vector.broadcast %337 : vector<1x48xf32> to vector<2x48xf32>
    %339 = arith.mulf %336, %338 : vector<2x48xf32>
    %cst_97 = arith.constant dense<0.000000e+00> : vector<2xf32>
    %340 = vector.multi_reduction <add>, %339, %cst_97 [1] : vector<2x48xf32> to vector<2xf32>
    %341 = vector.shape_cast %340 : vector<2xf32> to vector<2x1xf32>
    %342 = vector.extract_strided_slice %300 {offsets = [4, 0], sizes = [1, 1], strides = [1, 1]} : vector<8x128xf32> to vector<1x1xf32>
    %343 = vector.broadcast %342 : vector<1x1xf32> to vector<2x1xf32>
    %344 = arith.addf %341, %343 : vector<2x1xf32>
    %345 = arith.negf %344 : vector<2x1xf32>
    %346 = math.exp %345 : vector<2x1xf32>
    %cst_98 = arith.constant 1.000000e+00 : f32
    %347 = vector.broadcast %cst_98 : f32 to vector<2x1xf32>
    %348 = arith.addf %347, %346 : vector<2x1xf32>
    %349 = arith.divf %347, %348 : vector<2x1xf32>
    %c0_99 = arith.constant 0 : index
    %c0_100 = arith.constant 0 : index
    %350 = vector.load %arg5[%c0_99, %c0_100] : memref<2x1xf32, #tpu.memory_space<vmem>>, vector<2x1xf32>
    tpu.vector_store %arg5[%c0_99, %c0_100], %349 {strides = array<i32>} : memref<2x1xf32, #tpu.memory_space<vmem>>, vector<2x1xf32>,
    return
  }
}

</mosaic_0001>

<bundles_post_ra>
// kernel: forward.1
= control target key start
LH: loop header
LB: loop body
LE: loop exit
PB: predicated region body
PF: predicated region fallthrough
CT: control target
= control target key end

     0   :  { %10 = vsyncpa [#allocation3], 0  ;;  %s3776_s18 = smov [#allocation2]   ;;  %s4364_s0 = inlined_call_operand.vmem [shape: s32[24,1], index: 0, kind: input, shape index: {}]   ;;  %s4365_s1 = inlined_call_operand.vmem [shape: s32[24,1], index: 1, kind: input, shape index: {}]   ;;  %s4366_s2 = inlined_call_operand.vmem [shape: f32[1,24], index: 2, kind: input, shape index: {}]   ;;  %s4367_s3 = inlined_call_operand.vmem [shape: f32[2,16], index: 3, kind: input, shape index: {}]   ;;  %s4368_s4 = inlined_call_operand.hbm [shape: f32[704,128], index: 4, kind: input, shape index: {}]   ;;  %s4369_s5 = inlined_call_operand.vmem [shape: f32[2,1], index: 5, kind: output, shape index: {}]  }
   0x1   :  { %s24_s19 = sshll.u32 %s3776_s18, 4  ;;  %s3752_s22 = scalar_lea.hbm %s4368_s4, 11264  ;;  %s25_s19 = int_to_ptr.vmem [resolvable:$true] %s24_s19 }
   0x2   :  { %p3753_p0 = scmp.ne.s32.totalorder %s4368_s4, %s3752_s22  ;;  %p3756_p1 = scmp.lt.u32.totalorder %s3752_s22, %s4368_s4 }
   0x4   :  { %p3758_p2 = pnand %p3756_p1, %p3753_p0 }
   0x6   :  { %3761 = shalt.err (!%p3758_p2)
}
   0x7   :  { %s3762_s27 = scalar_lea.vmem %s25_s19, 11264  ;;  %p3767_p4 = scmp.lt.s32.totalorder %s25_s19, %s25_s19 }
   0x8   :  { %p3763_p3 = scmp.ne.s32.totalorder %s25_s19, %s3762_s27  ;;  %p3768_p5 = scmp.lt.s32.totalorder %s3762_s27, %s3762_s27 }
   0xa   :  { %p3769_p6 = por %p3768_p5, %p3767_p4 }
   0xc   :  { %p3770_p7 = pnand %p3769_p6, %p3763_p3 }
   0xe   :  { %3773 = shalt.err (!%p3770_p7)
}
   0xf   :  { %s3777_s28 = smov 128   ;;  %s3778_s29 = smov 8  }
  0x10   :  { %30 = dma.hbm_to_vmem [thread:$0]  %s4368_s4, 11264, %s25_s19, [#allocation3], %s3777_s28, %s3777_s28, %s3778_s29  }
  0x11   :  { %3774 = dma.done.wait [#allocation3], 11264  }
  0x12   :  { %3775 = vsyncadd [#allocation3], 4294956032  ;;  %v3779_v0 = vmov 0   ;;  %v3780_v1 = vmov 0.0|0.0   ;;  %v34_v2 = vld [vmem:[%s4364_s0] sm:$0xff]  ;;  %v36_v3 = vld [vmem:[%s4364_s0 + $0x10] sm:$0xff]  ;;  %v37_v24 = vlaneseq }
  0x13   :  { %3607 = vset.pattern.permute.xlu0 %v3779_v0  ;;  %3608 = vset.pattern.permute.xlu1 %v3779_v0  ;;  %v160_v4 = vld [vmem:[%s4365_s1 + $0x8] sm:$0xff]  ;;  %v159_v5 = vld [vmem:[%s4365_s1] sm:$0xff]  ;;  %v161_v6 = vld [vmem:[%s4365_s1 + $0x10] sm:$0xff]  ;;  %vm3781_vm1 = vmmov 0   ;;  %v3782_v10 = vmov 0.0   ;;  %vm68_vm4 = vcmask 523264  }
  0x14   :  { %3444 = vmatprep.subr.bf16.mxu0 %v3780_v1  ;;  %3456 = vmatprep.subr.bf16.mxu1 %v3780_v1  ;;  %v35_v7 = vld [vmem:[%s4364_s0 + $0x8] sm:$0xff]  ;;  %vm162_vm0 = vcmp.eq.s32.totalorder %v159_v5, 0  ;;  %v57_v8 = vld [vmem:[#allocation2] sm:$0xff]  ;;  %vm163_vm2 = vcmp.eq.s32.totalorder %v160_v4, 0  ;;  %vm164_vm3 = vcmp.eq.s32.totalorder %v161_v6, 0  ;;  %v59_v13 = vld [vmem:[#allocation2 + $0x10] sm:$0xff] }
  0x15   :  { %40 = vperm.xlu0 %3607, %v34_v2   ;;  %46 = vperm.xlu1 %3608, %v36_v3   ;;  %v58_v9 = vld [vmem:[#allocation2 + $0x8] sm:$0xff]  ;;  %v165_v11 = vsel %vm162_vm0, 1, %v3779_v0  ;;  %v60_v14 = vld [vmem:[#allocation2 + $0x18] sm:$0xff]  ;;  %v166_v15 = vsel %vm163_vm2, 1, %v3779_v0  ;;  %v167_v16 = vsel %vm164_vm3, 1, %v3779_v0  ;;  %v61_v18 = vld [vmem:[#allocation2 + $0x20] sm:$0xff] }
  0x16   :  { %3083 = vmatprep.mubr.msk.f32.mxu0 %vm3781_vm1, %v3782_v10  ;;  %3100 = vmatprep.mubr.msk.f32.mxu1 %vm3781_vm1, %v3782_v10  ;;  %v3445_v12 = vpack.c.bf16 %v58_v9, %v57_v8  ;;  %v3448_v17 = vpack.c.bf16 %v60_v14, %v59_v13  ;;  %v62_v19 = vld [vmem:[#allocation2 + $0x28] sm:$0xff]  ;;  %v63_v21 = vld [vmem:[#allocation2 + $0x30] sm:$0xff]  ;;  %v64_v22 = vld [vmem:[#allocation2 + $0x38] sm:$0xff]  ;;  %v38_v25 = vand.u32 127, %v37_v24  ;;  %v3869_v32 = vshrl.u32 %v37_v24, 7  ;;  %s3783_s0 = smov 96  }
  0x17   :  { %v3451_v20 = vpack.c.bf16 %v62_v19, %v61_v18  ;;  %v3454_v23 = vpack.c.bf16 %v64_v22, %v63_v21  ;;  %v158_v35 = vld [vmem:[#allocation2 + $0x58] sm:$0xff]  ;;  %v65_v37 = vld [vmem:[#allocation2 + $0x40] sm:$0xff]  ;;  %v66_v45 = vld [vmem:[#allocation2 + $0x48] sm:$0xff]  ;;  %vm195_vm9 = vcmask 261120   ;;  %s3784_s1 = smov 80   ;;  %s3785_s18 = smov 112  }
  0x18   :  { %3446 = vmatpush3.bf16.msra.mxu0 %v3445_v12  ;;  %v3872_v33 = vsub.s32 0, %v3869_v32  ;;  %v3875_v34 = vsub.s32 1, %v3869_v32  ;;  %v67_v53 = vld [vmem:[#allocation2 + $0x50] sm:$0xff]  ;;  %v267_v18 = vld [vmem:[#allocation2 + $0xb8] sm:$0xff]  ;;  %v268_v19 = vld [vmem:[#allocation2 + $0xc0] sm:$0xff]  ;;  %vm396_vm12 = vcmask 130048  }
  0x19   :  { %43 = vperm.xlu0 %3607, %v35_v7   ;;  %169 = vperm.xlu1 %3608, %v165_v11   ;;  %vm3929_vm13 = vmpackc.low %vm396_vm12, %vm396_vm12  ;;  %vm489_vm14 = vcmask 195584   ;;  %s3787_s21 = smov 48   ;;  %s3788_s22 = smov 16   ;;  %vm2628_vm15 = vcmask 123904   ;;  %vm2811_vm0 = vcmask 386048  }
  0x1a   :  { %3447 = vmatprep.subr.bf16.mxu0 %v3780_v1  ;;  %v183_v38 = vrot.slane %v158_v35, %v3872_v33  ;;  %v187_v39 = vrot.slane %v158_v35, %v3875_v34 }
  0x1c   :  { %3449 = vmatpush3.bf16.msra.mxu0 %v3448_v17 }
  0x1d   :  { %172 = vperm.xlu0 %3607, %v166_v15   ;;  %175 = vperm.xlu1 %3608, %v167_v16   ;;  %v265_v15 = vld [vmem:[#allocation2 + $0xa8] sm:$0xff]  ;;  %v266_v16 = vld [vmem:[#allocation2 + $0xb0] sm:$0xff] }
  0x1e   :  { %3450 = vmatprep.subr.bf16.mxu0 %v3780_v1  ;;  %v3457_v17 = vpack.c.bf16 %v266_v16, %v265_v15  ;;  %v253_v16 = vld [vmem:[#allocation2 + $0x68] sm:$0xff] }
  0x20   :  { %3452 = vmatpush3.bf16.msra.mxu0 %v3451_v20  ;;  %3458 = vmatpush3.bf16.msra.mxu1 %v3457_v17  ;;  %v3460_v20 = vpack.c.bf16 %v268_v19, %v267_v18  ;;  %v254_v18 = vld [vmem:[#allocation2 + $0x70] sm:$0xff] }
  0x21   :  { %3453 = vmatprep.subr.bf16.mxu0 %v3780_v1  ;;  %3459 = vmatprep.subr.bf16.mxu1 %v3780_v1 }
  0x24   :  { %3455 = vmatpush3.bf16.msra.mxu0 %v3454_v23  ;;  %3461 = vmatpush3.bf16.msra.mxu1 %v3460_v20 }
  0x25   :  { %3466 = vmatprep.subr.bf16.mxu0 %v3780_v1  ;;  %3462 = vmatprep.subr.bf16.mxu1 %v3780_v1 }
  0x94   :  { %v41_v26 = vpop.permute.xlu0 %40  ;;  %v47_v28 = vpop.permute.xlu1 %46 }
  0x95   :  { %vm48_vm5 = vcmp.eq.s32.totalorder %v41_v26, %v38_v25  ;;  %vm50_vm7 = vcmp.eq.s32.totalorder %v47_v28, %v38_v25 }
  0x96   :  { %v2833_v27 = vsel %vm48_vm5, 1.0, %v3782_v10  ;;  %v2835_v31 = vsel %vm50_vm7, 1.0, %v3782_v10 }
  0x97   :  { %3084 = vmatmul.mubr.msk.f32.vlgmr.msra.gmra.mrb[0].mxu0 %vm68_vm4, %v2833_v27 }
  0x98   :  { %v44_v29 = vpop.permute.xlu0 %43  ;;  %3086 = vmatprep.mubr.msk.f32.mxu0 %vm3781_vm1, %v3782_v10  ;;  %v170_v36 = vpop.permute.xlu1 %169 }
  0x99   :  { %vm49_vm6 = vcmp.eq.s32.totalorder %v44_v29, %v38_v25  ;;  %vm177_vm8 = vcmp.eq.s32.totalorder %v170_v36, 1 }
  0x9a   :  { %v2834_v30 = vsel %vm49_vm6, 1.0, %v3782_v10  ;;  %v188_v44 = vsel %vm177_vm8, %v183_v38, %v187_v39 }
  0x9b   :  { %3087 = vmatmul.mubr.msk.f32.gmra.mrb[2].mxu0 %vm68_vm4, %v2834_v30  ;;  %v194_v30 = vld [vmem:[#allocation2 + $0x60] sm:$0xff] }
  0x9c   :  { %3089 = vmatprep.mubr.msk.f32.mxu0 %vm3781_vm1, %v3782_v10  ;;  %v173_v40 = vpop.permute.xlu0 %172  ;;  %v176_v47 = vpop.permute.xlu1 %175 }
  0x9d   :  { %vm178_vm10 = vcmp.eq.s32.totalorder %v173_v40, 1  ;;  %vm179_vm11 = vcmp.eq.s32.totalorder %v176_v47, 1 }
  0x9e   :  { %v189_v52 = vsel %vm178_vm10, %v183_v38, %v187_v39  ;;  %v190_v59 = vsel %vm179_vm11, %v183_v38, %v187_v39 }
  0x9f   :  { %3090 = vmatmul.mubr.msk.f32.gmra.mrb[4].mxu0 %vm68_vm4, %v2835_v31  ;;  %v239_v31 = vrot.slane %v194_v30, %v3872_v33 }
  0xa0   :  { %3130 = vmatprep.mubr.msk.f32.mxu0 %vm3781_vm1, %v3782_v10 }
 0x16a   :  { %v144_v41 = vpop.f32.mrb[0].mxu0 }
 0x16b   :  { %v145_v42 = vadd.f32 %v144_v41, %v65_v37  ;;  %v3085_v43 = vpop.f32.mrb[1].mxu0  ;;  %v246_v37 = vrot.slane %v194_v30, %v3875_v34 }
 0x16d   :  { %v191_v46 = vadd.f32 %v188_v44, %v145_v42 }
 0x16e   :  { %v149_v48 = vpop.f32.mrb[2].mxu0 }
 0x16f   :  { %v150_v49 = vadd.f32 %v149_v48, %v66_v45  ;;  %v3088_v50 = vpop.f32.mrb[3].mxu0  ;;  %v196_v51 = vsel %vm195_vm9, %v191_v46, 0.0  ;;  %v3907_v48 = vld [vmem:[#allocation2 + $0x188] sm:$0xff] }
 0x170   :  { %197 = vadd.xlane.f32.xlu0 %v196_v51  ;;  %v297_v50 = vrot.slane %v3907_v48, %v3872_v33 }
 0x171   :  { %v192_v54 = vadd.f32 %v189_v52, %v150_v49 }
 0x172   :  { %v154_v55 = vpop.f32.mrb[4].mxu0 }
 0x173   :  { %v155_v56 = vadd.f32 %v154_v55, %v67_v53  ;;  %v199_v57 = vsel %vm195_vm9, %v192_v54, 0.0  ;;  %v3091_v58 = vpop.f32.mrb[5].mxu0 }
 0x174   :  { %200 = vadd.xlane.f32.xlu1 %v199_v57 }
 0x175   :  { %v193_v60 = vadd.f32 %v190_v59, %v155_v56 }
 0x177   :  { %v202_v61 = vsel %vm195_vm9, %v193_v60, 0.0 }
 0x178   :  { %203 = vadd.xlane.f32.xlu0 %v202_v61 }
 0x1fd   :  { %v198_v62 = vpop.xlane.xlu0 %197 }
 0x1fe   :  { %v206_v63 = vmul.f32 0.03125, %v198_v62 }
 0x200   :  { %v209_v0 = vsub.f32 %v191_v46, %v206_v63 }
 0x201   :  { %v201_v2 = vpop.xlane.xlu1 %200 }
 0x202   :  { %v207_v3 = vmul.f32 0.03125, %v201_v2  ;;  %v212_v4 = vmul.f32 %v209_v0, %v209_v0 }
 0x204   :  { %v210_v5 = vsub.f32 %v192_v54, %v207_v3  ;;  %v215_v6 = vsel %vm195_vm9, %v212_v4, 0.0 }
 0x205   :  { %216 = vadd.xlane.f32.xlu0 %v215_v6  ;;  %v204_v7 = vpop.xlane.xlu0 %203 }
 0x206   :  { %v208_v8 = vmul.f32 0.03125, %v204_v7  ;;  %v213_v9 = vmul.f32 %v210_v5, %v210_v5 }
 0x208   :  { %v211_v11 = vsub.f32 %v193_v60, %v208_v8  ;;  %v218_v12 = vsel %vm195_vm9, %v213_v9, 0.0 }
 0x209   :  { %219 = vadd.xlane.f32.xlu1 %v218_v12  ;;  %v250_v12 = vld [vmem:[%s4366_s2] sm:$0x1]  ;;  %s3786_s2 = smov 64  }
 0x20a   :  { %v214_v13 = vmul.f32 %v211_v11, %v211_v11 }
 0x20c   :  { %v221_v14 = vsel %vm195_vm9, %v214_v13, 0.0  ;;  %v2839_v13 = vadd.f32 -1.0, %v250_v12 }
 0x20d   :  { %222 = vadd.xlane.f32.xlu0 %v221_v14 }
 0x20e   :  { %v252_v14 = vmul.f32 1e+09, %v2839_v13 }
 0x210   :  { %v260_v15 = vrot.slane %v252_v14, %v3872_v33 }
 0x212   :  { %v3966_v17 = vadd.f32 %v260_v15, %v253_v16 }
 0x292   :  { %v217_v21 = vpop.xlane.xlu0 %216 }
 0x293   :  { %v224_v22 = vmul.f32 0.03125, %v217_v21 }
 0x295   :  { %v227_v23 = vadd.f32 1e-12, %v224_v22  ;;  %v3969_v22 = vadd.f32 %v260_v15, %v254_v18 }
 0x296   :  { %v220_v24 = vpop.xlane.xlu1 %219 }
 0x297   :  { %3654 = vrsqrt.f32 %v227_v23  ;;  %v225_v25 = vmul.f32 0.03125, %v220_v24  ;;  %v255_v23 = vld [vmem:[#allocation2 + $0x78] sm:$0xff] }
 0x299   :  { %v228_v26 = vadd.f32 1e-12, %v225_v25 }
 0x29a   :  { %v223_v27 = vpop.xlane.xlu0 %222 }
 0x29b   :  { %3656 = vrsqrt.f32 %v228_v26  ;;  %v226_v28 = vmul.f32 0.03125, %v223_v27 }
 0x29d   :  { %v229_v29 = vadd.f32 1e-12, %v226_v28  ;;  %v3973_v28 = vadd.f32 %v260_v15, %v255_v23 }
 0x29f   :  { %3658 = vrsqrt.f32 %v229_v29 }
 0x2a1   :  { %v3655_v35 = vpop.eup %3654 }
 0x2a2   :  { %v233_v36 = vmul.f32 %v3655_v35, %v209_v0 }
 0x2a4   :  { %v240_v38 = vmul.f32 %v239_v31, %v233_v36 }
 0x2a5   :  { %v3657_v39 = vpop.eup %3656 }
 0x2a6   :  { %v3889_v40 = vadd.f32 %v246_v37, %v240_v38  ;;  %v234_v41 = vmul.f32 %v3657_v39, %v210_v5 }
 0x2a8   :  { %3101 = vmatmul.mubr.msk.f32.vlgmr.msra.gmra.mrb[0].mxu1 %vm195_vm9, %v3889_v40  ;;  %v241_v42 = vmul.f32 %v239_v31, %v234_v41 }
 0x2a9   :  { %v3659_v43 = vpop.eup %3658  ;;  %3103 = vmatprep.mubr.msk.f32.mxu1 %vm3781_vm1, %v3782_v10 }
 0x2aa   :  { %v3895_v44 = vadd.f32 %v246_v37, %v241_v42  ;;  %v235_v45 = vmul.f32 %v3659_v43, %v211_v11 }
 0x2ac   :  { %3104 = vmatmul.mubr.msk.f32.gmra.mrb[2].mxu1 %vm195_vm9, %v3895_v44  ;;  %v242_v46 = vmul.f32 %v239_v31, %v235_v45 }
 0x2ad   :  { %3106 = vmatprep.mubr.msk.f32.mxu1 %vm3781_vm1, %v3782_v10 }
 0x2ae   :  { %v3901_v47 = vadd.f32 %v246_v37, %v242_v46 }
 0x2b0   :  { %3107 = vmatmul.mubr.msk.f32.gmra.mrb[4].mxu1 %vm195_vm9, %v3901_v47 }
 0x2b1   :  { %3115 = vmatprep.mubr.msk.f32.mxu1 %vm3781_vm1, %v3782_v10 }
 0x37b   :  { %v373_v49 = vpop.f32.mrb[0].mxu1 }
 0x37c   :  { %v3102_v51 = vpop.f32.mrb[1].mxu1  ;;  %v374_v53 = vadd.f32 %v373_v49, %v297_v50 }
 0x37f   :  { %v378_v52 = vpop.f32.mrb[2].mxu1 }
 0x380   :  { %v379_v54 = vadd.f32 %v378_v52, %v297_v50  ;;  %v3105_v55 = vpop.f32.mrb[3].mxu1 }
 0x382   :  { %v3911_v56 = vpack.i.bf16 %v379_v54, %v374_v53 }
 0x383   :  { %v383_v57 = vpop.f32.mrb[4].mxu1 }
 0x384   :  { %v3913_v58 = vadd.f32 %v383_v57, %v297_v50  ;;  %3610 = vrot.lane.b32.xlu1 %v3911_v56, %s3783_s0  ;;  %v3108_v59 = vpop.f32.mrb[5].mxu1 }
 0x386   :  { %394 = vrot.lane.b32.xlu0 %v3913_v58, %s3783_s0 }
 0x388   :  { %3615 = vrot.lane.b32.xlu1 %v3911_v56, %s3784_s1 }
 0x38a   :  { %621 = vrot.lane.b32.xlu0 %v374_v53, %s3785_s18 }
 0x38c   :  { %631 = vrot.lane.b32.xlu1 %v3913_v58, %s3784_s1 }
 0x38e   :  { %625 = vrot.lane.b32.xlu0 %v3913_v58, %s3785_s18 }
 0x390   :  { %623 = vrot.lane.b32.xlu1 %v379_v54, %s3785_s18 }
 0x3f6   :  { %v3611_v60 = vpop.permute.xlu1 %3610 }
 0x3f7   :  { %v3613_v61 = vunpack.i.h.bf16 %v3611_v60  ;;  %v3612_v62 = vunpack.i.l.bf16 %v3611_v60 }
 0x3f8   :  { %v395_v5 = vpop.permute.xlu0 %394 }
 0x3f9   :  { %v3463_v0 = vpack.c.bf16 %v3613_v61, %v3612_v62 }
 0x3fa   :  { %v3616_v2 = vpop.permute.xlu1 %3615 }
 0x3fb   :  { %3465 = vmatpush3.bf16.xpose.msk.msra.mxu1 %vm3929_vm13, %v3463_v0  ;;  %v3618_v3 = vunpack.i.h.bf16 %v3616_v2  ;;  %v3617_v4 = vunpack.i.l.bf16 %v3616_v2 }
 0x3fc   :  { %3113 = vmatprep.subr.mxu1 %v3782_v10  ;;  %v622_v8 = vpop.permute.xlu0 %621 }
 0x3fd   :  { %v3470_v6 = vpack.c.bf16 %v3618_v3, %v3617_v4 }
 0x3fe   :  { %v632_v7 = vpop.permute.xlu1 %631 }
 0x400   :  { %v626_v11 = vpop.permute.xlu0 %625 }
 0x402   :  { %v624_v9 = vpop.permute.xlu1 %623 }
 0x403   :  { %3114 = vmatpush3.xpose.msk.msra.mxu1 %vm396_vm12, %v395_v5 }
 0x404   :  { %3469 = vmatprep.subr.bf16.mxu1 %v3780_v1 }
 0x406   :  { %3116 = vmatmul.mubr.msk.f32.vlgmr.msra.gmra.mrb[6].mxu1 %vm396_vm12, %v374_v53 }
 0x407   :  { %3472 = vmatpush3.bf16.xpose.msk.msra.mxu1 %vm3929_vm13, %v3470_v6  ;;  %3118 = vmatprep.mubr.msk.f32.mxu1 %vm3781_vm1, %v3782_v10 }
 0x408   :  { %3143 = vmatprep.subr.mxu1 %v3782_v10 }
 0x40a   :  { %3119 = vmatmul.mubr.msk.f32.gmra.mrb[8].mxu1 %vm396_vm12, %v379_v54 }
 0x40b   :  { %3121 = vmatprep.mubr.msk.f32.mxu1 %vm3781_vm1, %v3782_v10 }
 0x40e   :  { %3122 = vmatmul.mubr.msk.f32.gmra.mrb[10].mxu1 %vm396_vm12, %v3913_v58 }
 0x40f   :  { %3144 = vmatpush3.xpose.msk.msra.mxu1 %vm396_vm12, %v632_v7  ;;  %3145 = vmatprep.mubr.msk.f32.mxu1 %vm3781_vm1, %v3782_v10 }
 0x410   :  { %3476 = vmatprep.subr.bf16.mxu1 %v3780_v1 }
 0x412   :  { %3146 = vmatmul.mubr.msk.f32.vlgmr.msra.gmra.mrb[12].mxu1 %vm396_vm12, %v622_v8 }
 0x413   :  { %3148 = vmatprep.mubr.msk.f32.mxu1 %vm3781_vm1, %v3782_v10 }
 0x416   :  { %3149 = vmatmul.mubr.msk.f32.gmra.mrb[14].mxu1 %vm396_vm12, %v624_v9 }
 0x417   :  { %3151 = vmatprep.mubr.msk.f32.mxu1 %vm3781_vm1, %v3782_v10 }
 0x41a   :  { %3152 = vmatmul.mubr.msk.f32.gmra.mrb[16].mxu1 %vm396_vm12, %v626_v11 }
 0x41b   :  { %3177 = vmatprep.mubr.msk.f32.mxu1 %vm3781_vm1, %v3782_v10 }
 0x4d9   :  { %v475_v19 = vpop.f32.mrb[6].mxu1 }
 0x4da   :  { %v476_v20 = vadd.f32 %v475_v19, %v3966_v17  ;;  %v3117_v21 = vpop.f32.mrb[7].mxu1 }
 0x4dc   :  { %v490_v24 = vsel %vm489_vm14, %v476_v20, -inf }
 0x4dd   :  { %491 = vmax.xlane.f32.xlu1 %v490_v24  ;;  %v480_v25 = vpop.f32.mrb[8].mxu1 }
 0x4de   :  { %v481_v26 = vadd.f32 %v480_v25, %v3969_v22  ;;  %v3120_v27 = vpop.f32.mrb[9].mxu1 }
 0x4e0   :  { %v493_v29 = vsel %vm489_vm14, %v481_v26, -inf }
 0x4e1   :  { %494 = vmax.xlane.f32.xlu0 %v493_v29  ;;  %v485_v30 = vpop.f32.mrb[10].mxu1 }
 0x4e2   :  { %v486_v31 = vadd.f32 %v485_v30, %v3973_v28  ;;  %v3123_v35 = vpop.f32.mrb[11].mxu1 }
 0x4e4   :  { %v496_v36 = vsel %vm489_vm14, %v486_v31, -inf }
 0x4e5   :  { %497 = vmax.xlane.f32.xlu0 %v496_v36  ;;  %v711_v37 = vpop.f32.mrb[12].mxu1 }
 0x4e6   :  { %v712_v38 = vadd.f32 %v711_v37, %v3966_v17  ;;  %v3147_v39 = vpop.f32.mrb[13].mxu1 }
 0x4e8   :  { %v725_v41 = vsel %vm489_vm14, %v712_v38, -inf }
 0x4e9   :  { %726 = vmax.xlane.f32.xlu1 %v725_v41  ;;  %v716_v42 = vpop.f32.mrb[14].mxu1 }
 0x4ea   :  { %v717_v43 = vadd.f32 %v716_v42, %v3969_v22  ;;  %v3150_v45 = vpop.f32.mrb[15].mxu1 }
 0x4ec   :  { %v728_v46 = vsel %vm489_vm14, %v717_v43, -inf }
 0x4ed   :  { %729 = vmax.xlane.f32.xlu0 %v728_v46  ;;  %v721_v49 = vpop.f32.mrb[16].mxu1 }
 0x4ee   :  { %v722_v50 = vadd.f32 %v721_v49, %v3973_v28  ;;  %v3153_v51 = vpop.f32.mrb[17].mxu1 }
 0x4f0   :  { %v731_v52 = vsel %vm489_vm14, %v722_v50, -inf }
 0x4f1   :  { %732 = vmax.xlane.f32.xlu1 %v731_v52 }
 0x56a   :  { %v492_v53 = vpop.xlane.xlu1 %491 }
 0x56b   :  { %v499_v54 = vsub.f32 %v476_v20, %v492_v53 }
 0x56d   :  { %v502_v55 = vmul.f32 1.442695, %v499_v54 }
 0x56e   :  { %v495_v57 = vpop.xlane.xlu0 %494 }
 0x56f   :  { %3660 = vpow2.f32 %v502_v55  ;;  %v500_v59 = vsub.f32 %v481_v26, %v495_v57 }
 0x571   :  { %v504_v60 = vmul.f32 1.442695, %v500_v59 }
 0x572   :  { %v498_v61 = vpop.xlane.xlu0 %497 }
 0x573   :  { %3662 = vpow2.f32 %v504_v60  ;;  %v501_v62 = vsub.f32 %v486_v31, %v498_v61 }
 0x575   :  { %v506_v0 = vmul.f32 1.442695, %v501_v62  ;;  %v269_v62 = vld [vmem:[#allocation2 + $0xc8] sm:$0xff] }
 0x576   :  { %v727_v2 = vpop.xlane.xlu1 %726 }
 0x577   :  { %3664 = vpow2.f32 %v506_v0  ;;  %v734_v3 = vsub.f32 %v712_v38, %v727_v2  ;;  %v270_v0 = vld [vmem:[#allocation2 + $0xd0] sm:$0xff]  ;;  %v271_v2 = vld [vmem:[#allocation2 + $0xd8] sm:$0xff] }
 0x579   :  { %v3661_v4 = vpop.eup %3660  ;;  %v737_v5 = vmul.f32 1.442695, %v734_v3  ;;  %v3477_v3 = vpack.c.bf16 %v270_v0, %v269_v62  ;;  %v273_v0 = vld [vmem:[#allocation2 + $0xe8] sm:$0xff] }
 0x57a   :  { %v508_v6 = vsel %vm489_vm14, %v3661_v4, 0.0  ;;  %v730_v14 = vpop.xlane.xlu0 %729 }
 0x57b   :  { %3666 = vpow2.f32 %v737_v5  ;;  %509 = vadd.xlane.f32.xlu0 %v508_v6  ;;  %v735_v15 = vsub.f32 %v717_v43, %v730_v14  ;;  %3478 = vmatpush3.bf16.msra.mxu1 %v3477_v3 }
 0x57c   :  { %3479 = vmatprep.subr.bf16.mxu1 %v3780_v1 }
 0x57d   :  { %v3663_v7 = vpop.eup %3662  ;;  %v739_v18 = vmul.f32 1.442695, %v735_v15 }
 0x57e   :  { %v511_v8 = vsel %vm489_vm14, %v3663_v7, 0.0  ;;  %v733_v16 = vpop.xlane.xlu1 %732 }
 0x57f   :  { %512 = vadd.xlane.f32.xlu1 %v511_v8  ;;  %v736_v19 = vsub.f32 %v722_v50, %v733_v16  ;;  %3668 = vpow2.f32 %v739_v18 }
 0x581   :  { %v3665_v9 = vpop.eup %3664  ;;  %v741_v20 = vmul.f32 1.442695, %v736_v19 }
 0x582   :  { %v514_v11 = vsel %vm489_vm14, %v3665_v9, 0.0 }
 0x583   :  { %515 = vadd.xlane.f32.xlu0 %v514_v11  ;;  %3670 = vpow2.f32 %v741_v20 }
 0x585   :  { %v3987_v12 = vpop.eup %3666 }
 0x586   :  { %v743_v13 = vsel %vm489_vm14, %v3987_v12, 0.0 }
 0x587   :  { %744 = vadd.xlane.f32.xlu1 %v743_v13 }
 0x589   :  { %v3669_v21 = vpop.eup %3668 }
 0x58a   :  { %v746_v23 = vsel %vm489_vm14, %v3669_v21, 0.0 }
 0x58d   :  { %v3671_v24 = vpop.eup %3670 }
 0x58e   :  { %v749_v25 = vsel %vm489_vm14, %v3671_v24, 0.0 }
 0x598   :  { %3620 = vrot.lane.b32.xlu1 %v3911_v56, %s3786_s2 }
 0x599   :  { %527 = vrot.lane.b32.xlu0 %v3913_v58, %s3786_s2 }
 0x5b8   :  { %747 = vadd.xlane.f32.xlu0 %v746_v23 }
 0x5bc   :  { %750 = vadd.xlane.f32.xlu1 %v749_v25 }
 0x5ce   :  { %3625 = vrot.lane.b32.xlu0 %v3911_v56, %s3787_s21 }
 0x5d2   :  { %762 = vrot.lane.b32.xlu0 %v3913_v58, %s3787_s21 }
 0x608   :  { %v510_v26 = vpop.xlane.xlu0 %509 }
 0x609   :  { %3672 = vrcp.f32 %v510_v26 }
 0x60c   :  { %v513_v27 = vpop.xlane.xlu1 %512 }
 0x60d   :  { %3674 = vrcp.f32 %v513_v27  ;;  %v874_v27 = vrot.slane %v3907_v48, %v3875_v34 }
 0x610   :  { %v516_v30 = vpop.xlane.xlu0 %515 }
 0x611   :  { %3676 = vrcp.f32 %v516_v30 }
 0x613   :  { %v3673_v38 = vpop.eup %3672 }
 0x614   :  { %v745_v29 = vpop.xlane.xlu1 %744  ;;  %v520_v39 = vmul.f32 %v3673_v38, %v3661_v4  ;;  %v528_v56 = vpop.permute.xlu0 %527  ;;  %v272_v4 = vld [vmem:[#allocation2 + $0xe0] sm:$0xff] }
 0x615   :  { %3678 = vrcp.f32 %v745_v29  ;;  %v3480_v5 = vpack.c.bf16 %v272_v4, %v271_v2  ;;  %v274_v2 = vld [vmem:[#allocation2 + $0xf0] sm:$0xff]  ;;  %v275_v4 = vld [vmem:[#allocation2 + $0xf8] sm:$0xff] }
 0x616   :  { %v3483_v3 = vpack.c.bf16 %v274_v2, %v273_v0  ;;  %v4091_v2 = vsub.s32 4, %v3869_v32 }
 0x617   :  { %v3675_v41 = vpop.eup %3674  ;;  %3481 = vmatpush3.bf16.msra.mxu1 %v3480_v5  ;;  %v276_v5 = vld [vmem:[#allocation2 + $0x100] sm:$0xff] }
 0x618   :  { %v3621_v31 = vpop.permute.xlu1 %3620  ;;  %v521_v58 = vmul.f32 %v3675_v41, %v3663_v7  ;;  %3488 = vmatprep.subr.bf16.mxu1 %v3780_v1 }
 0x619   :  { %v3623_v35 = vunpack.i.h.bf16 %v3621_v31  ;;  %v3622_v36 = vunpack.i.l.bf16 %v3621_v31 }
 0x61b   :  { %v3467_v37 = vpack.c.bf16 %v3623_v35, %v3622_v36  ;;  %v3677_v42 = vpop.eup %3676 }
 0x61c   :  { %v522_v43 = vmul.f32 %v3677_v42, %v3665_v9 }
 0x61d   :  { %3468 = vmatpush3.bf16.msra.mxu0 %v3467_v37 }
 0x61e   :  { %3128 = vmatprep.subr.mxu0 %v3782_v10 }
 0x61f   :  { %v3679_v53 = vpop.eup %3678 }
 0x620   :  { %v755_v54 = vmul.f32 %v3679_v53, %v3987_v12 }
 0x621   :  { %3129 = vmatpush3.msra.mxu0 %v528_v56 }
 0x622   :  { %3131 = vmatmul.mubr.msk.f32.vlgmr.msra.gmra.mrb[6].mxu0 %vm489_vm14, %v520_v39  ;;  %3473 = vmatprep.subr.bf16.mxu0 %v3780_v1 }
 0x623   :  { %3133 = vmatprep.mubr.msk.f32.mxu0 %vm3781_vm1, %v3782_v10 }
 0x626   :  { %3134 = vmatmul.mubr.msk.f32.gmra.mrb[8].mxu0 %vm489_vm14, %v521_v58 }
 0x627   :  { %3136 = vmatprep.mubr.msk.f32.mxu0 %vm3781_vm1, %v3782_v10 }
 0x62a   :  { %3137 = vmatmul.mubr.msk.f32.gmra.mrb[10].mxu0 %vm489_vm14, %v522_v43 }
 0x62b   :  { %3160 = vmatprep.mubr.msk.f32.mxu0 %vm3781_vm1, %v3782_v10 }
 0x645   :  { %v748_v45 = vpop.xlane.xlu0 %747 }
 0x646   :  { %3680 = vrcp.f32 %v748_v45 }
 0x649   :  { %v3626_v46 = vpop.permute.xlu0 %3625  ;;  %v751_v49 = vpop.xlane.xlu1 %750 }
 0x64a   :  { %v3628_v50 = vunpack.i.h.bf16 %v3626_v46  ;;  %v3627_v51 = vunpack.i.l.bf16 %v3626_v46  ;;  %3682 = vrcp.f32 %v751_v49 }
 0x64c   :  { %v3474_v52 = vpack.c.bf16 %v3628_v50, %v3627_v51 }
 0x64d   :  { %v763_v55 = vpop.permute.xlu0 %762 }
 0x64e   :  { %3475 = vmatpush3.bf16.msra.mxu0 %v3474_v52 }
 0x64f   :  { %3158 = vmatprep.subr.mxu0 %v3782_v10 }
 0x650   :  { %v3681_v57 = vpop.eup %3680 }
 0x651   :  { %v756_v59 = vmul.f32 %v3681_v57, %v3669_v21 }
 0x652   :  { %3159 = vmatpush3.msra.mxu0 %v763_v55 }
 0x653   :  { %3161 = vmatmul.mubr.msk.f32.vlgmr.msra.gmra.mrb[12].mxu0 %vm489_vm14, %v755_v54  ;;  %3482 = vmatprep.subr.bf16.mxu0 %v3780_v1 }
 0x654   :  { %3163 = vmatprep.mubr.msk.f32.mxu0 %vm3781_vm1, %v3782_v10  ;;  %v3683_v60 = vpop.eup %3682  ;;  %3484 = vmatpush3.bf16.msra.mxu0 %v3483_v3  ;;  %v1023_v3 = vrot.slane %v3907_v48, %v4091_v2 }
 0x655   :  { %v757_v61 = vmul.f32 %v3683_v60, %v3671_v24  ;;  %3485 = vmatprep.subr.bf16.mxu0 %v3780_v1 }
 0x657   :  { %3164 = vmatmul.mubr.msk.f32.gmra.mrb[14].mxu0 %vm489_vm14, %v756_v59 }
 0x658   :  { %3166 = vmatprep.mubr.msk.f32.mxu0 %vm3781_vm1, %v3782_v10 }
 0x65b   :  { %3167 = vmatmul.mubr.msk.f32.gmra.mrb[16].mxu0 %vm489_vm14, %v757_v61 }
 0x65c   :  { %3194 = vmatprep.mubr.msk.f32.mxu0 %vm3781_vm1, %v3782_v10 }
 0x6f5   :  { %v607_v6 = vpop.f32.mrb[6].mxu0 }
 0x6f6   :  { %v3132_v7 = vpop.f32.mrb[7].mxu0 }
 0x6f7   :  { %v277_v7 = vld [vmem:[#allocation2 + $0x108] sm:$0xff] }
 0x6f9   :  { %v612_v8 = vpop.f32.mrb[8].mxu0 }
 0x6fa   :  { %v3135_v9 = vpop.f32.mrb[9].mxu0 }
 0x6fd   :  { %v617_v11 = vpop.f32.mrb[10].mxu0 }
 0x6fe   :  { %v3138_v12 = vpop.f32.mrb[11].mxu0 }
 0x726   :  { %v842_v13 = vpop.f32.mrb[12].mxu0 }
 0x727   :  { %859 = vrot.lane.b32.xlu0 %v842_v13, %s3788_s22  ;;  %v3162_v14 = vpop.f32.mrb[13].mxu0 }
 0x72a   :  { %v847_v15 = vpop.f32.mrb[14].mxu0 }
 0x72b   :  { %861 = vrot.lane.b32.xlu0 %v847_v15, %s3788_s22  ;;  %v3165_v16 = vpop.f32.mrb[15].mxu0 }
 0x72e   :  { %v852_v18 = vpop.f32.mrb[16].mxu0 }
 0x72f   :  { %863 = vrot.lane.b32.xlu0 %v852_v18, %s3788_s22  ;;  %v3168_v19 = vpop.f32.mrb[17].mxu0 }
 0x799   :  { %v860_v20 = vpop.permute.xlu0 %859 }
 0x79a   :  { %v868_v21 = vsel %vm396_vm12, %v607_v6, %v860_v20  ;;  %v3486_v6 = vpack.c.bf16 %v276_v5, %v275_v4  ;;  %v4056_v20 = vsub.s32 2, %v3869_v32 }
 0x79b   :  { %3178 = vmatmul.mubr.msk.f32.vlgmr.msra.gmra.mrb[18].mxu1 %vm195_vm9, %v868_v21 }
 0x79c   :  { %3180 = vmatprep.mubr.msk.f32.mxu1 %vm3781_vm1, %v3782_v10  ;;  %3487 = vmatpush3.bf16.msra.mxu0 %v3486_v6 }
 0x79d   :  { %v862_v23 = vpop.permute.xlu0 %861  ;;  %3512 = vmatprep.subr.bf16.mxu0 %v3780_v1 }
 0x79e   :  { %v869_v24 = vsel %vm396_vm12, %v612_v8, %v862_v23  ;;  %v278_v8 = vld [vmem:[#allocation2 + $0x110] sm:$0xff]  ;;  %v4059_v23 = vsub.s32 3, %v3869_v32 }
 0x79f   :  { %3181 = vmatmul.mubr.msk.f32.gmra.mrb[20].mxu1 %vm195_vm9, %v869_v24  ;;  %v3489_v9 = vpack.c.bf16 %v278_v8, %v277_v7  ;;  %v1009_v24 = vrot.slane %v3907_v48, %v4056_v20 }
 0x7a0   :  { %3183 = vmatprep.mubr.msk.f32.mxu1 %vm3781_vm1, %v3782_v10 }
 0x7a1   :  { %v864_v25 = vpop.permute.xlu0 %863  ;;  %3490 = vmatpush3.bf16.msra.mxu1 %v3489_v9 }
 0x7a2   :  { %v870_v26 = vsel %vm396_vm12, %v617_v11, %v864_v25  ;;  %3491 = vmatprep.subr.bf16.mxu1 %v3780_v1 }
 0x7a3   :  { %3184 = vmatmul.mubr.msk.f32.gmra.mrb[22].mxu1 %vm195_vm9, %v870_v26  ;;  %v1016_v26 = vrot.slane %v3907_v48, %v4059_v23 }
 0x7a4   :  { %3235 = vmatprep.mubr.msk.f32.mxu1 %vm3781_vm1, %v3782_v10 }
 0x86e   :  { %v950_v29 = vpop.f32.mrb[18].mxu1 }
 0x86f   :  { %v951_v30 = vadd.f32 %v950_v29, %v874_v27  ;;  %v3179_v31 = vpop.f32.mrb[19].mxu1 }
 0x871   :  { %v964_v35 = vadd.f32 %v951_v30, %v3889_v40 }
 0x872   :  { %v955_v36 = vpop.f32.mrb[20].mxu1 }
 0x873   :  { %v956_v37 = vadd.f32 %v955_v36, %v874_v27  ;;  %v3182_v38 = vpop.f32.mrb[21].mxu1  ;;  %v967_v39 = vsel %vm195_vm9, %v964_v35, 0.0 }
 0x874   :  { %968 = vadd.xlane.f32.xlu0 %v967_v39 }
 0x875   :  { %v965_v56 = vadd.f32 %v956_v37, %v3895_v44 }
 0x876   :  { %v960_v41 = vpop.f32.mrb[22].mxu1 }
 0x877   :  { %v961_v58 = vadd.f32 %v960_v41, %v874_v27  ;;  %v3185_v42 = vpop.f32.mrb[23].mxu1  ;;  %v970_v43 = vsel %vm195_vm9, %v965_v56, 0.0 }
 0x878   :  { %971 = vadd.xlane.f32.xlu1 %v970_v43  ;;  %v280_v42 = vld [vmem:[#allocation2 + $0x120] sm:$0xff] }
 0x879   :  { %v966_v45 = vadd.f32 %v961_v58, %v3901_v47  ;;  %v279_v58 = vld [vmem:[#allocation2 + $0x118] sm:$0xff] }
 0x87a   :  { %v3492_v43 = vpack.c.bf16 %v280_v42, %v279_v58 }
 0x87b   :  { %v973_v46 = vsel %vm195_vm9, %v966_v45, 0.0 }
 0x87c   :  { %974 = vadd.xlane.f32.xlu1 %v973_v46  ;;  %3493 = vmatpush3.bf16.msra.mxu1 %v3492_v43  ;;  %v282_v46 = vld [vmem:[#allocation2 + $0x130] sm:$0xff] }
 0x87d   :  { %3494 = vmatprep.subr.bf16.mxu1 %v3780_v1 }
 0x901   :  { %v969_v40 = vpop.xlane.xlu0 %968 }
 0x902   :  { %v976_v49 = vmul.f32 0.03125, %v969_v40 }
 0x904   :  { %v979_v50 = vsub.f32 %v964_v35, %v976_v49  ;;  %v283_v49 = vld [vmem:[#allocation2 + $0x138] sm:$0xff] }
 0x905   :  { %v972_v51 = vpop.xlane.xlu1 %971 }
 0x906   :  { %v977_v52 = vmul.f32 0.03125, %v972_v51  ;;  %v982_v53 = vmul.f32 %v979_v50, %v979_v50 }
 0x908   :  { %v980_v54 = vsub.f32 %v965_v56, %v977_v52  ;;  %v985_v44 = vsel %vm195_vm9, %v982_v53, 0.0  ;;  %v285_v52 = vld [vmem:[#allocation2 + $0x148] sm:$0xff]  ;;  %v286_v53 = vld [vmem:[#allocation2 + $0x150] sm:$0xff] }
 0x909   :  { %986 = vadd.xlane.f32.xlu1 %v985_v44  ;;  %v975_v55 = vpop.xlane.xlu1 %974  ;;  %v287_v44 = vld [vmem:[#allocation2 + $0x158] sm:$0xff] }
 0x90a   :  { %v978_v57 = vmul.f32 0.03125, %v975_v55  ;;  %v983_v59 = vmul.f32 %v980_v54, %v980_v54  ;;  %v288_v55 = vld [vmem:[#allocation2 + $0x160] sm:$0xff] }
 0x90c   :  { %v981_v60 = vsub.f32 %v966_v45, %v978_v57  ;;  %v988_v61 = vsel %vm195_vm9, %v983_v59, 0.0  ;;  %v281_v45 = vld [vmem:[#allocation2 + $0x128] sm:$0xff]  ;;  %v3504_v57 = vpack.c.bf16 %v288_v55, %v287_v44 }
 0x90d   :  { %989 = vadd.xlane.f32.xlu1 %v988_v61  ;;  %v3495_v40 = vpack.c.bf16 %v282_v46, %v281_v45  ;;  %v289_v59 = vld [vmem:[#allocation2 + $0x168] sm:$0xff] }
 0x90e   :  { %v984_v47 = vmul.f32 %v981_v60, %v981_v60 }
 0x90f   :  { %3496 = vmatpush3.bf16.msra.mxu1 %v3495_v40 }
 0x910   :  { %v991_v62 = vsel %vm195_vm9, %v984_v47, 0.0  ;;  %3497 = vmatprep.subr.bf16.mxu1 %v3780_v1  ;;  %v291_v47 = vld [vmem:[#allocation2 + $0x178] sm:$0xff] }
 0x911   :  { %992 = vadd.xlane.f32.xlu1 %v991_v62  ;;  %v292_v62 = vld [vmem:[#allocation2 + $0x180] sm:$0xff] }
 0x912   :  { %v3510_v0 = vpack.c.bf16 %v292_v62, %v291_v47 }
 0x996   :  { %v987_v11 = vpop.xlane.xlu1 %986 }
 0x997   :  { %v994_v12 = vmul.f32 0.03125, %v987_v11 }
 0x999   :  { %v997_v13 = vadd.f32 1e-12, %v994_v12 }
 0x99a   :  { %v990_v14 = vpop.xlane.xlu1 %989 }
 0x99b   :  { %3684 = vrsqrt.f32 %v997_v13  ;;  %v995_v15 = vmul.f32 0.03125, %v990_v14 }
 0x99d   :  { %v998_v16 = vadd.f32 1e-12, %v995_v15 }
 0x99e   :  { %v993_v18 = vpop.xlane.xlu1 %992 }
 0x99f   :  { %3686 = vrsqrt.f32 %v998_v16  ;;  %v996_v19 = vmul.f32 0.03125, %v993_v18 }
 0x9a1   :  { %v999_v21 = vadd.f32 1e-12, %v996_v19 }
 0x9a3   :  { %3688 = vrsqrt.f32 %v999_v21 }
 0x9a5   :  { %v3685_v25 = vpop.eup %3684 }
 0x9a6   :  { %v1003_v27 = vmul.f32 %v3685_v25, %v979_v50  ;;  %v284_v50 = vld [vmem:[#allocation2 + $0x140] sm:$0xff] }
 0x9a7   :  { %v3498_v51 = vpack.c.bf16 %v284_v50, %v283_v49 }
 0x9a8   :  { %v1010_v29 = vmul.f32 %v1009_v24, %v1003_v27 }
 0x9a9   :  { %v3687_v30 = vpop.eup %3686  ;;  %3499 = vmatpush3.bf16.msra.mxu1 %v3498_v51 }
 0x9aa   :  { %v4065_v31 = vadd.f32 %v1016_v26, %v1010_v29  ;;  %v1004_v35 = vmul.f32 %v3687_v30, %v980_v54  ;;  %3500 = vmatprep.subr.bf16.mxu1 %v3780_v1  ;;  %v3501_v54 = vpack.c.bf16 %v286_v53, %v285_v52  ;;  %v1142_v53 = vsub.s32 5, %v3869_v32 }
 0x9ac   :  { %3195 = vmatmul.mubr.msk.f32.vlgmr.msra.gmra.mrb[18].mxu0 %vm195_vm9, %v4065_v31  ;;  %v1011_v36 = vmul.f32 %v1009_v24, %v1004_v35 }
 0x9ad   :  { %v3689_v37 = vpop.eup %3688  ;;  %3197 = vmatprep.mubr.msk.f32.mxu0 %vm3781_vm1, %v3782_v10  ;;  %3502 = vmatpush3.bf16.msra.mxu1 %v3501_v54  ;;  %v1143_v54 = vrot.slane %v3907_v48, %v1142_v53 }
 0x9ae   :  { %v4071_v38 = vadd.f32 %v1016_v26, %v1011_v36  ;;  %v1005_v39 = vmul.f32 %v3689_v37, %v981_v60  ;;  %3503 = vmatprep.subr.bf16.mxu1 %v3780_v1  ;;  %v290_v60 = vld [vmem:[#allocation2 + $0x170] sm:$0xff] }
 0x9af   :  { %v3507_v61 = vpack.c.bf16 %v290_v60, %v289_v59 }
 0x9b0   :  { %3198 = vmatmul.mubr.msk.f32.gmra.mrb[20].mxu0 %vm195_vm9, %v4071_v38  ;;  %v1012_v56 = vmul.f32 %v1009_v24, %v1005_v39 }
 0x9b1   :  { %3200 = vmatprep.mubr.msk.f32.mxu0 %vm3781_vm1, %v3782_v10  ;;  %3505 = vmatpush3.bf16.msra.mxu1 %v3504_v57 }
 0x9b2   :  { %v4077_v41 = vadd.f32 %v1016_v26, %v1012_v56  ;;  %3506 = vmatprep.subr.bf16.mxu1 %v3780_v1 }
 0x9b4   :  { %3201 = vmatmul.mubr.msk.f32.gmra.mrb[22].mxu0 %vm195_vm9, %v4077_v41 }
 0x9b5   :  { %3252 = vmatprep.mubr.msk.f32.mxu0 %vm3781_vm1, %v3782_v10  ;;  %3508 = vmatpush3.bf16.msra.mxu1 %v3507_v61 }
 0x9b6   :  { %3509 = vmatprep.subr.bf16.mxu1 %v3780_v1 }
 0x9b9   :  { %3511 = vmatpush3.bf16.msra.mxu1 %v3510_v0 }
 0x9ba   :  { %3525 = vmatprep.subr.bf16.mxu1 %v3780_v1 }
 0xa7f   :  { %v1099_v4 = vpop.f32.mrb[18].mxu0 }
 0xa80   :  { %v1100_v5 = vadd.f32 %v1099_v4, %v1023_v3  ;;  %v3196_v6 = vpop.f32.mrb[19].mxu0 }
 0xa82   :  { %v1113_v7 = vmul.f32 %v1100_v5, %v1100_v5 }
 0xa83   :  { %v1104_v8 = vpop.f32.mrb[20].mxu0 }
 0xa84   :  { %v1116_v9 = vmul.f32 %v1113_v7, %v1100_v5  ;;  %v1105_v11 = vadd.f32 %v1104_v8, %v1023_v3  ;;  %v3199_v12 = vpop.f32.mrb[21].mxu0 }
 0xa86   :  { %v1119_v13 = vmul.f32 0.044715, %v1116_v9  ;;  %v1114_v14 = vmul.f32 %v1105_v11, %v1105_v11 }
 0xa87   :  { %v1109_v15 = vpop.f32.mrb[22].mxu0 }
 0xa88   :  { %v1122_v16 = vadd.f32 %v1119_v13, %v1100_v5  ;;  %v1117_v18 = vmul.f32 %v1114_v14, %v1105_v11  ;;  %v1110_v19 = vadd.f32 %v1109_v15, %v1023_v3  ;;  %v3202_v21 = vpop.f32.mrb[23].mxu0 }
 0xa8a   :  { %v1125_v24 = vmul.f32 0.7978846, %v1122_v16  ;;  %v1120_v25 = vmul.f32 0.044715, %v1117_v18  ;;  %v1115_v26 = vmul.f32 %v1110_v19, %v1110_v19 }
 0xa8c   :  { %3690 = vtanh.f32 %v1125_v24  ;;  %v1123_v27 = vadd.f32 %v1120_v25, %v1105_v11  ;;  %v1118_v29 = vmul.f32 %v1115_v26, %v1110_v19  ;;  %v1280_v26 = vld [vmem:[#allocation2 + $0x190] sm:$0xff] }
 0xa8e   :  { %v1126_v30 = vmul.f32 0.7978846, %v1123_v27  ;;  %v1121_v35 = vmul.f32 0.044715, %v1118_v29  ;;  %v1281_v27 = vld [vmem:[#allocation2 + $0x198] sm:$0xff] }
 0xa8f   :  { %v3513_v29 = vpack.c.bf16 %v1281_v27, %v1280_v26 }
 0xa90   :  { %v1124_v36 = vadd.f32 %v1121_v35, %v1110_v19  ;;  %3692 = vtanh.f32 %v1126_v30  ;;  %v1282_v30 = vld [vmem:[#allocation2 + $0x1a0] sm:$0xff]  ;;  %v1283_v35 = vld [vmem:[#allocation2 + $0x1a8] sm:$0xff] }
 0xa91   :  { %3514 = vmatpush3.bf16.msra.mxu0 %v3513_v29 }
 0xa92   :  { %v1127_v37 = vmul.f32 0.7978846, %v1124_v36  ;;  %3515 = vmatprep.subr.bf16.mxu0 %v3780_v1  ;;  %v3516_v36 = vpack.c.bf16 %v1283_v35, %v1282_v30 }
 0xa94   :  { %3694 = vtanh.f32 %v1127_v37 }
 0xa95   :  { %3517 = vmatpush3.bf16.msra.mxu0 %v3516_v36 }
 0xa96   :  { %v3691_v39 = vpop.eup %3690  ;;  %3518 = vmatprep.subr.bf16.mxu0 %v3780_v1 }
 0xa97   :  { %v1131_v56 = vadd.f32 1.0, %v3691_v39 }
 0xa99   :  { %v1134_v58 = vmul.f32 0.5, %v1131_v56 }
 0xa9a   :  { %v3693_v42 = vpop.eup %3692 }
 0xa9b   :  { %v1137_v43 = vmul.f32 %v1134_v58, %v1100_v5  ;;  %v1132_v45 = vadd.f32 1.0, %v3693_v42 }
 0xa9d   :  { %3236 = vmatmul.mubr.f32.vlgmr.msra.gmra.mrb[24].mxu1 %v1137_v43  ;;  %v1135_v46 = vmul.f32 0.5, %v1132_v45 }
 0xa9e   :  { %v3695_v40 = vpop.eup %3694  ;;  %3238 = vmatprep.mubr.msk.f32.mxu1 %vm3781_vm1, %v3782_v10 }
 0xa9f   :  { %v1138_v49 = vmul.f32 %v1135_v46, %v1105_v11  ;;  %v1133_v50 = vadd.f32 1.0, %v3695_v40  ;;  %v1268_v40 = vsub.s32 6, %v3869_v32 }
 0xaa1   :  { %3239 = vmatmul.mubr.f32.gmra.mrb[26].mxu1 %v1138_v49  ;;  %v1136_v51 = vmul.f32 0.5, %v1133_v50  ;;  %v1275_v50 = vsub.s32 7, %v3869_v32 }
 0xaa2   :  { %3241 = vmatprep.mubr.msk.f32.mxu1 %vm3781_vm1, %v3782_v10 }
 0xaa3   :  { %v1139_v52 = vmul.f32 %v1136_v51, %v1110_v19  ;;  %v1269_v51 = vrot.slane %v3907_v48, %v1268_v40 }
 0xaa5   :  { %3242 = vmatmul.mubr.f32.gmra.mrb[28].mxu1 %v1139_v52 }
 0xaa6   :  { %3297 = vmatprep.mubr.msk.f32.mxu1 %vm3781_vm1, %v3782_v10 }
 0xb70   :  { %v1210_v44 = vpop.f32.mrb[24].mxu1 }
 0xb71   :  { %v1211_v55 = vadd.f32 %v1210_v44, %v1143_v54  ;;  %v3237_v57 = vpop.f32.mrb[25].mxu1 }
 0xb73   :  { %v1224_v59 = vadd.f32 %v1211_v55, %v4065_v31 }
 0xb74   :  { %v1215_v60 = vpop.f32.mrb[26].mxu1 }
 0xb75   :  { %v1216_v61 = vadd.f32 %v1215_v60, %v1143_v54  ;;  %v3240_v47 = vpop.f32.mrb[27].mxu1  ;;  %v1227_v62 = vsel %vm195_vm9, %v1224_v59, 0.0 }
 0xb76   :  { %1228 = vadd.xlane.f32.xlu1 %v1227_v62 }
 0xb77   :  { %v1225_v0 = vadd.f32 %v1216_v61, %v4071_v38 }
 0xb78   :  { %v1220_v3 = vpop.f32.mrb[28].mxu1 }
 0xb79   :  { %v1221_v4 = vadd.f32 %v1220_v3, %v1143_v54  ;;  %v3243_v5 = vpop.f32.mrb[29].mxu1  ;;  %v1230_v6 = vsel %vm195_vm9, %v1225_v0, 0.0  ;;  %v1276_v54 = vrot.slane %v3907_v48, %v1275_v50 }
 0xb7a   :  { %1231 = vadd.xlane.f32.xlu0 %v1230_v6 }
 0xb7b   :  { %v1226_v7 = vadd.f32 %v1221_v4, %v4077_v41  ;;  %v4142_v4 = vld [vmem:[#allocation2 + $0x270] sm:$0xff] }
 0xb7c   :  { %v1312_v6 = vrot.slane %v4142_v4, %v3872_v33 }
 0xb7d   :  { %v1233_v8 = vsel %vm195_vm9, %v1226_v7, 0.0 }
 0xb7e   :  { %1234 = vadd.xlane.f32.xlu1 %v1233_v8 }
 0xc03   :  { %v1229_v31 = vpop.xlane.xlu1 %1228 }
 0xc04   :  { %v1236_v9 = vmul.f32 0.03125, %v1229_v31 }
 0xc06   :  { %v1239_v11 = vsub.f32 %v1224_v59, %v1236_v9 }
 0xc07   :  { %v1232_v12 = vpop.xlane.xlu0 %1231 }
 0xc08   :  { %v1237_v13 = vmul.f32 0.03125, %v1232_v12  ;;  %v1242_v14 = vmul.f32 %v1239_v11, %v1239_v11 }
 0xc0a   :  { %v1240_v15 = vsub.f32 %v1225_v0, %v1237_v13  ;;  %v1245_v38 = vsel %vm195_vm9, %v1242_v14, 0.0 }
 0xc0b   :  { %1246 = vadd.xlane.f32.xlu0 %v1245_v38  ;;  %v1235_v16 = vpop.xlane.xlu1 %1234 }
 0xc0c   :  { %v1238_v18 = vmul.f32 0.03125, %v1235_v16  ;;  %v1243_v19 = vmul.f32 %v1240_v15, %v1240_v15 }
 0xc0e   :  { %v1241_v21 = vsub.f32 %v1226_v7, %v1238_v18  ;;  %v1248_v24 = vsel %vm195_vm9, %v1243_v19, 0.0 }
 0xc0f   :  { %1249 = vadd.xlane.f32.xlu1 %v1248_v24 }
 0xc10   :  { %v1244_v41 = vmul.f32 %v1241_v21, %v1241_v21 }
 0xc12   :  { %v1251_v25 = vsel %vm195_vm9, %v1244_v41, 0.0 }
 0xc13   :  { %1252 = vadd.xlane.f32.xlu0 %v1251_v25 }
 0xc98   :  { %v1247_v37 = vpop.xlane.xlu0 %1246 }
 0xc99   :  { %v1254_v39 = vmul.f32 0.03125, %v1247_v37 }
 0xc9b   :  { %v1257_v56 = vadd.f32 1e-12, %v1254_v39 }
 0xc9c   :  { %v1250_v58 = vpop.xlane.xlu1 %1249 }
 0xc9d   :  { %3696 = vrsqrt.f32 %v1257_v56  ;;  %v1255_v42 = vmul.f32 0.03125, %v1250_v58 }
 0xc9f   :  { %v1258_v43 = vadd.f32 1e-12, %v1255_v42 }
 0xca0   :  { %v1253_v45 = vpop.xlane.xlu0 %1252 }
 0xca1   :  { %3698 = vrsqrt.f32 %v1258_v43  ;;  %v1256_v46 = vmul.f32 0.03125, %v1253_v45 }
 0xca3   :  { %v1259_v49 = vadd.f32 1e-12, %v1256_v46 }
 0xca5   :  { %3700 = vrsqrt.f32 %v1259_v49 }
 0xca7   :  { %v3697_v52 = vpop.eup %3696 }
 0xca8   :  { %v1263_v44 = vmul.f32 %v3697_v52, %v1239_v11 }
 0xcaa   :  { %v1270_v55 = vmul.f32 %v1269_v51, %v1263_v44 }
 0xcab   :  { %v3699_v57 = vpop.eup %3698 }
 0xcac   :  { %v4124_v59 = vadd.f32 %v1276_v54, %v1270_v55  ;;  %v1264_v60 = vmul.f32 %v3699_v57, %v1240_v15 }
 0xcae   :  { %3253 = vmatmul.mubr.msk.f32.vlgmr.msra.gmra.mrb[24].mxu0 %vm195_vm9, %v4124_v59  ;;  %v1271_v61 = vmul.f32 %v1269_v51, %v1264_v60 }
 0xcaf   :  { %v3701_v47 = vpop.eup %3700  ;;  %3255 = vmatprep.mubr.msk.f32.mxu0 %vm3781_vm1, %v3782_v10 }
 0xcb0   :  { %v4130_v62 = vadd.f32 %v1276_v54, %v1271_v61  ;;  %v1265_v0 = vmul.f32 %v3701_v47, %v1241_v21 }
 0xcb2   :  { %3256 = vmatmul.mubr.msk.f32.gmra.mrb[26].mxu0 %vm195_vm9, %v4130_v62  ;;  %v1272_v48 = vmul.f32 %v1269_v51, %v1265_v0 }
 0xcb3   :  { %3258 = vmatprep.mubr.msk.f32.mxu0 %vm3781_vm1, %v3782_v10 }
 0xcb4   :  { %v4136_v3 = vadd.f32 %v1276_v54, %v1272_v48 }
 0xcb6   :  { %3259 = vmatmul.mubr.msk.f32.gmra.mrb[28].mxu0 %vm195_vm9, %v4136_v3 }
 0xcb7   :  { %3267 = vmatprep.mubr.msk.f32.mxu0 %vm3781_vm1, %v3782_v10 }
 0xd81   :  { %v1388_v5 = vpop.f32.mrb[24].mxu0 }
 0xd82   :  { %v3254_v7 = vpop.f32.mrb[25].mxu0  ;;  %v1389_v31 = vadd.f32 %v1388_v5, %v1312_v6 }
 0xd85   :  { %v1393_v8 = vpop.f32.mrb[26].mxu0 }
 0xd86   :  { %v1394_v9 = vadd.f32 %v1393_v8, %v1312_v6  ;;  %v3257_v11 = vpop.f32.mrb[27].mxu0 }
 0xd88   :  { %v4146_v12 = vpack.i.bf16 %v1394_v9, %v1389_v31 }
 0xd89   :  { %v1398_v13 = vpop.f32.mrb[28].mxu0 }
 0xd8a   :  { %v4148_v14 = vadd.f32 %v1398_v13, %v1312_v6  ;;  %3630 = vrot.lane.b32.xlu1 %v4146_v12, %s3783_s0  ;;  %v3260_v15 = vpop.f32.mrb[29].mxu0 }
 0xd8c   :  { %1409 = vrot.lane.b32.xlu0 %v4148_v14, %s3783_s0 }
 0xd8e   :  { %3635 = vrot.lane.b32.xlu1 %v4146_v12, %s3784_s1 }
 0xd90   :  { %1634 = vrot.lane.b32.xlu0 %v1389_v31, %s3785_s18 }
 0xd92   :  { %1644 = vrot.lane.b32.xlu1 %v4148_v14, %s3784_s1 }
 0xd94   :  { %1638 = vrot.lane.b32.xlu0 %v4148_v14, %s3785_s18 }
 0xd96   :  { %1636 = vrot.lane.b32.xlu1 %v1394_v9, %s3785_s18 }
 0xdfc   :  { %v3631_v38 = vpop.permute.xlu1 %3630 }
 0xdfd   :  { %v3633_v16 = vunpack.i.h.bf16 %v3631_v38  ;;  %v3632_v18 = vunpack.i.l.bf16 %v3631_v38 }
 0xdfe   :  { %v1410_v26 = vpop.permute.xlu0 %1409 }
 0xdff   :  { %v3519_v19 = vpack.c.bf16 %v3633_v16, %v3632_v18 }
 0xe00   :  { %v3636_v21 = vpop.permute.xlu1 %3635 }
 0xe01   :  { %v3638_v24 = vunpack.i.h.bf16 %v3636_v21  ;;  %v3637_v41 = vunpack.i.l.bf16 %v3636_v21  ;;  %3521 = vmatpush3.bf16.xpose.msk.msra.mxu0 %vm3929_vm13, %v3519_v19 }
 0xe02   :  { %3265 = vmatprep.subr.mxu0 %v3782_v10  ;;  %v1635_v29 = vpop.permute.xlu0 %1634 }
 0xe03   :  { %v3526_v25 = vpack.c.bf16 %v3638_v24, %v3637_v41 }
 0xe04   :  { %v1645_v27 = vpop.permute.xlu1 %1644 }
 0xe05   :  { %3528 = vmatpush3.bf16.xpose.msk.msra.mxu1 %vm3929_vm13, %v3526_v25 }
 0xe06   :  { %3295 = vmatprep.subr.mxu1 %v3782_v10  ;;  %v1639_v35 = vpop.permute.xlu0 %1638 }
 0xe08   :  { %v1637_v30 = vpop.permute.xlu1 %1636 }
 0xe09   :  { %3266 = vmatpush3.xpose.msk.msra.mxu0 %vm396_vm12, %v1410_v26 }
 0xe0a   :  { %3522 = vmatprep.subr.bf16.mxu0 %v3780_v1 }
 0xe0c   :  { %3268 = vmatmul.mubr.msk.f32.vlgmr.msra.gmra.mrb[30].mxu0 %vm396_vm12, %v1389_v31 }
 0xe0d   :  { %3296 = vmatpush3.xpose.msk.msra.mxu1 %vm396_vm12, %v1645_v27  ;;  %3270 = vmatprep.mubr.msk.f32.mxu0 %vm3781_vm1, %v3782_v10 }
 0xe0e   :  { %3532 = vmatprep.subr.bf16.mxu1 %v3780_v1 }
 0xe10   :  { %3271 = vmatmul.mubr.msk.f32.gmra.mrb[32].mxu0 %vm396_vm12, %v1394_v9  ;;  %3298 = vmatmul.mubr.msk.f32.vlgmr.msra.gmra.mrb[30].mxu1 %vm396_vm12, %v1635_v29 }
 0xe11   :  { %3273 = vmatprep.mubr.msk.f32.mxu0 %vm3781_vm1, %v3782_v10  ;;  %3300 = vmatprep.mubr.msk.f32.mxu1 %vm3781_vm1, %v3782_v10 }
 0xe14   :  { %3274 = vmatmul.mubr.msk.f32.gmra.mrb[34].mxu0 %vm396_vm12, %v4148_v14  ;;  %3301 = vmatmul.mubr.msk.f32.gmra.mrb[32].mxu1 %vm396_vm12, %v1637_v30 }
 0xe15   :  { %3303 = vmatprep.mubr.msk.f32.mxu1 %vm3781_vm1, %v3782_v10  ;;  %3282 = vmatprep.mubr.msk.f32.mxu0 %vm3781_vm1, %v3782_v10 }
 0xe18   :  { %3304 = vmatmul.mubr.msk.f32.gmra.mrb[34].mxu1 %vm396_vm12, %v1639_v35 }
 0xe19   :  { %3329 = vmatprep.mubr.msk.f32.mxu1 %vm3781_vm1, %v3782_v10 }
 0xedf   :  { %v1489_v36 = vpop.f32.mrb[30].mxu0 }
 0xee0   :  { %v1490_v37 = vadd.f32 %v1489_v36, %v3966_v17  ;;  %v3269_v39 = vpop.f32.mrb[31].mxu0 }
 0xee2   :  { %v1503_v56 = vsel %vm489_vm14, %v1490_v37, -inf }
 0xee3   :  { %1504 = vmax.xlane.f32.xlu1 %v1503_v56  ;;  %v1494_v58 = vpop.f32.mrb[32].mxu0  ;;  %v1724_v42 = vpop.f32.mrb[30].mxu1 }
 0xee4   :  { %v1495_v43 = vadd.f32 %v1494_v58, %v3969_v22  ;;  %v1725_v45 = vadd.f32 %v1724_v42, %v3966_v17  ;;  %v3272_v46 = vpop.f32.mrb[33].mxu0  ;;  %v3299_v49 = vpop.f32.mrb[31].mxu1 }
 0xee6   :  { %v1506_v51 = vsel %vm489_vm14, %v1495_v43, -inf  ;;  %v1738_v52 = vsel %vm489_vm14, %v1725_v45, -inf }
 0xee7   :  { %1507 = vmax.xlane.f32.xlu0 %v1506_v51  ;;  %v1499_v54 = vpop.f32.mrb[34].mxu0  ;;  %1739 = vmax.xlane.f32.xlu1 %v1738_v52  ;;  %v1729_v44 = vpop.f32.mrb[32].mxu1 }
 0xee8   :  { %v1500_v55 = vadd.f32 %v1499_v54, %v3973_v28  ;;  %v3275_v57 = vpop.f32.mrb[35].mxu0  ;;  %v3302_v60 = vpop.f32.mrb[33].mxu1  ;;  %v1730_v61 = vadd.f32 %v1729_v44, %v3969_v22 }
 0xeea   :  { %v1509_v47 = vsel %vm489_vm14, %v1500_v55, -inf  ;;  %v1741_v5 = vsel %vm489_vm14, %v1730_v61, -inf }
 0xeeb   :  { %1510 = vmax.xlane.f32.xlu0 %v1509_v47  ;;  %v1734_v17 = vpop.f32.mrb[34].mxu1 }
 0xeec   :  { %v1735_v0 = vadd.f32 %v1734_v17, %v3973_v28  ;;  %v3305_v48 = vpop.f32.mrb[35].mxu1 }
 0xeee   :  { %v1744_v6 = vsel %vm489_vm14, %v1735_v0, -inf }
 0xeef   :  { %1742 = vmax.xlane.f32.xlu0 %v1741_v5  ;;  %1745 = vmax.xlane.f32.xlu1 %v1744_v6 }
 0xf00   :  { %3640 = vrot.lane.b32.xlu1 %v4146_v12, %s3786_s2 }
 0xf70   :  { %v1505_v7 = vpop.xlane.xlu1 %1504 }
 0xf71   :  { %v1512_v8 = vsub.f32 %v1490_v37, %v1505_v7 }
 0xf73   :  { %v1515_v31 = vmul.f32 1.442695, %v1512_v8 }
 0xf74   :  { %v1508_v22 = vpop.xlane.xlu0 %1507  ;;  %v1740_v9 = vpop.xlane.xlu1 %1739 }
 0xf75   :  { %3702 = vpow2.f32 %v1515_v31  ;;  %v1513_v11 = vsub.f32 %v1495_v43, %v1508_v22  ;;  %v1747_v13 = vsub.f32 %v1725_v45, %v1740_v9 }
 0xf77   :  { %v1750_v15 = vmul.f32 1.442695, %v1747_v13  ;;  %v1517_v28 = vmul.f32 1.442695, %v1513_v11 }
 0xf78   :  { %v1511_v38 = vpop.xlane.xlu0 %1510 }
 0xf79   :  { %3704 = vpow2.f32 %v1750_v15  ;;  %v1514_v16 = vsub.f32 %v1500_v55, %v1511_v38 }
 0xf7a   :  { %3706 = vpow2.f32 %v1517_v28 }
 0xf7b   :  { %v1519_v41 = vmul.f32 1.442695, %v1514_v16  ;;  %v1284_v16 = vld [vmem:[#allocation2 + $0x1b0] sm:$0xff] }
 0xf7c   :  { %v1743_v18 = vpop.xlane.xlu0 %1742  ;;  %v1746_v19 = vpop.xlane.xlu1 %1745 }
 0xf7d   :  { %v1748_v21 = vsub.f32 %v1730_v61, %v1743_v18  ;;  %v1749_v26 = vsub.f32 %v1735_v0, %v1746_v19  ;;  %v1285_v18 = vld [vmem:[#allocation2 + $0x1b8] sm:$0xff]  ;;  %v1286_v19 = vld [vmem:[#allocation2 + $0x1c0] sm:$0xff] }
 0xf7f   :  { %v3703_v24 = vpop.eup %3702  ;;  %v1752_v25 = vmul.f32 1.442695, %v1748_v21  ;;  %v1754_v36 = vmul.f32 1.442695, %v1749_v26  ;;  %v3533_v21 = vpack.c.bf16 %v1285_v18, %v1284_v16 }
 0xf80   :  { %v3641_v27 = vpop.permute.xlu1 %3640  ;;  %v1521_v29 = vsel %vm489_vm14, %v3703_v24, 0.0 }
 0xf81   :  { %3708 = vpow2.f32 %v1752_v25  ;;  %v3643_v30 = vunpack.i.h.bf16 %v3641_v27  ;;  %v3642_v35 = vunpack.i.l.bf16 %v3641_v27  ;;  %1522 = vadd.xlane.f32.xlu0 %v1521_v29  ;;  %3534 = vmatpush3.bf16.msra.mxu1 %v3533_v21 }
 0xf82   :  { %3710 = vpow2.f32 %v1519_v41  ;;  %3535 = vmatprep.subr.bf16.mxu1 %v3780_v1 }
 0xf83   :  { %v3523_v37 = vpack.c.bf16 %v3643_v30, %v3642_v35  ;;  %v3705_v39 = vpop.eup %3704  ;;  %3712 = vpow2.f32 %v1754_v36 }
 0xf84   :  { %v1756_v56 = vsel %vm489_vm14, %v3705_v39, 0.0  ;;  %v3707_v58 = vpop.eup %3706 }
 0xf85   :  { %3524 = vmatpush3.bf16.msra.mxu0 %v3523_v37  ;;  %1757 = vadd.xlane.f32.xlu1 %v1756_v56  ;;  %v1524_v42 = vsel %vm489_vm14, %v3707_v58, 0.0 }
 0xf86   :  { %3280 = vmatprep.subr.mxu0 %v3782_v10 }
 0xf89   :  { %1525 = vadd.xlane.f32.xlu1 %v1524_v42 }
 0xf8b   :  { %v3709_v43 = vpop.eup %3708 }
 0xf8c   :  { %v1759_v45 = vsel %vm489_vm14, %v3709_v43, 0.0  ;;  %v3711_v46 = vpop.eup %3710 }
 0xf8d   :  { %1760 = vadd.xlane.f32.xlu0 %v1759_v45  ;;  %v1527_v49 = vsel %vm489_vm14, %v3711_v46, 0.0  ;;  %v3713_v51 = vpop.eup %3712 }
 0xf8e   :  { %v1762_v52 = vsel %vm489_vm14, %v3713_v51, 0.0 }
 0xf91   :  { %1528 = vadd.xlane.f32.xlu0 %v1527_v49 }
 0xf95   :  { %1763 = vadd.xlane.f32.xlu0 %v1762_v52 }
 0xf9a   :  { %3645 = vrot.lane.b32.xlu1 %v4146_v12, %s3787_s21 }
 0xf9e   :  { %1775 = vrot.lane.b32.xlu1 %v4148_v14, %s3787_s21 }
 0xfab   :  { %1540 = vrot.lane.b32.xlu0 %v4148_v14, %s3786_s2 }
0x100e   :  { %v1523_v44 = vpop.xlane.xlu0 %1522 }
0x100f   :  { %3714 = vrcp.f32 %v1523_v44 }
0x1012   :  { %v1758_v54 = vpop.xlane.xlu1 %1757 }
0x1016   :  { %v1526_v55 = vpop.xlane.xlu1 %1525 }
0x1017   :  { %3716 = vrcp.f32 %v1526_v55 }
0x1019   :  { %v3715_v17 = vpop.eup %3714 }
0x101a   :  { %v1761_v57 = vpop.xlane.xlu0 %1760  ;;  %v3646_v61 = vpop.permute.xlu1 %3645  ;;  %v1533_v12 = vmul.f32 %v3715_v17, %v3703_v24  ;;  %v1287_v24 = vld [vmem:[#allocation2 + $0x1c8] sm:$0xff] }
0x101b   :  { %v3648_v0 = vunpack.i.h.bf16 %v3646_v61  ;;  %v3647_v48 = vunpack.i.l.bf16 %v3646_v61  ;;  %v3536_v41 = vpack.c.bf16 %v1287_v24, %v1286_v19  ;;  %v1288_v24 = vld [vmem:[#allocation2 + $0x1d0] sm:$0xff] }
0x101d   :  { %v3530_v7 = vpack.c.bf16 %v3648_v0, %v3647_v48  ;;  %3537 = vmatpush3.bf16.msra.mxu1 %v3536_v41  ;;  %v1289_v41 = vld [vmem:[#allocation2 + $0x1d8] sm:$0xff] }
0x101e   :  { %v1529_v60 = vpop.xlane.xlu0 %1528  ;;  %v1776_v31 = vpop.permute.xlu1 %1775  ;;  %3544 = vmatprep.subr.bf16.mxu1 %v3780_v1 }
0x101f   :  { %3718 = vrcp.f32 %v1529_v60 }
0x1020   :  { %3720 = vrcp.f32 %v1758_v54  ;;  %v1887_v54 = vrot.slane %v4142_v4, %v3875_v34 }
0x1021   :  { %v3717_v6 = vpop.eup %3716  ;;  %3722 = vrcp.f32 %v1761_v57 }
0x1022   :  { %v1764_v47 = vpop.xlane.xlu0 %1763  ;;  %v1534_v14 = vmul.f32 %v3717_v6, %v3707_v58 }
0x1023   :  { %3724 = vrcp.f32 %v1764_v47 }
0x1026   :  { %v1541_v5 = vpop.permute.xlu0 %1540 }
0x1027   :  { %3281 = vmatpush3.msra.mxu0 %v1541_v5 }
0x1028   :  { %3283 = vmatmul.mubr.msk.f32.vlgmr.msra.gmra.mrb[36].mxu0 %vm489_vm14, %v1533_v12  ;;  %3529 = vmatprep.subr.bf16.mxu0 %v3780_v1 }
0x1029   :  { %3531 = vmatpush3.bf16.msra.mxu0 %v3530_v7  ;;  %3285 = vmatprep.mubr.msk.f32.mxu0 %vm3781_vm1, %v3782_v10  ;;  %v3719_v8 = vpop.eup %3718 }
0x102a   :  { %3310 = vmatprep.subr.mxu0 %v3782_v10  ;;  %v1535_v22 = vmul.f32 %v3719_v8, %v3711_v46  ;;  %v3721_v9 = vpop.eup %3720 }
0x102b   :  { %v1768_v11 = vmul.f32 %v3721_v9, %v3705_v39  ;;  %v3723_v13 = vpop.eup %3722 }
0x102c   :  { %3286 = vmatmul.mubr.msk.f32.gmra.mrb[38].mxu0 %vm489_vm14, %v1534_v14  ;;  %v1769_v15 = vmul.f32 %v3723_v13, %v3709_v43 }
0x102d   :  { %3311 = vmatpush3.msra.mxu0 %v1776_v31  ;;  %3288 = vmatprep.mubr.msk.f32.mxu0 %vm3781_vm1, %v3782_v10  ;;  %v3725_v28 = vpop.eup %3724 }
0x102e   :  { %3538 = vmatprep.subr.bf16.mxu0 %v3780_v1  ;;  %v1770_v38 = vmul.f32 %v3725_v28, %v3713_v51 }
0x1030   :  { %3289 = vmatmul.mubr.msk.f32.gmra.mrb[40].mxu0 %vm489_vm14, %v1535_v22 }
0x1031   :  { %3312 = vmatprep.mubr.msk.f32.mxu0 %vm3781_vm1, %v3782_v10 }
0x1034   :  { %3313 = vmatmul.mubr.msk.f32.vlgmr.msra.gmra.mrb[42].mxu0 %vm489_vm14, %v1768_v11 }
0x1035   :  { %3315 = vmatprep.mubr.msk.f32.mxu0 %vm3781_vm1, %v3782_v10 }
0x1038   :  { %3316 = vmatmul.mubr.msk.f32.gmra.mrb[44].mxu0 %vm489_vm14, %v1769_v15 }
0x1039   :  { %3318 = vmatprep.mubr.msk.f32.mxu0 %vm3781_vm1, %v3782_v10 }
0x103c   :  { %3319 = vmatmul.mubr.msk.f32.gmra.mrb[46].mxu0 %vm489_vm14, %v1770_v38 }
0x103d   :  { %3346 = vmatprep.mubr.msk.f32.mxu0 %vm3781_vm1, %v3782_v10 }
0x10fb   :  { %v1620_v25 = vpop.f32.mrb[36].mxu0 }
0x10fc   :  { %v3284_v26 = vpop.f32.mrb[37].mxu0 }
0x10fd   :  { %v1290_v26 = vld [vmem:[#allocation2 + $0x1e0] sm:$0xff] }
0x10ff   :  { %v1625_v27 = vpop.f32.mrb[38].mxu0 }
0x1100   :  { %v3287_v29 = vpop.f32.mrb[39].mxu0 }
0x1103   :  { %v1630_v30 = vpop.f32.mrb[40].mxu0 }
0x1104   :  { %v3290_v35 = vpop.f32.mrb[41].mxu0 }
0x1105   :  { %v1293_v35 = vld [vmem:[#allocation2 + $0x1f8] sm:$0xff] }
0x1107   :  { %v1855_v36 = vpop.f32.mrb[42].mxu0 }
0x1108   :  { %1872 = vrot.lane.b32.xlu1 %v1855_v36, %s3788_s22  ;;  %v3314_v37 = vpop.f32.mrb[43].mxu0 }
0x110b   :  { %v1860_v39 = vpop.f32.mrb[44].mxu0 }
0x110c   :  { %1874 = vrot.lane.b32.xlu0 %v1860_v39, %s3788_s22  ;;  %v3317_v56 = vpop.f32.mrb[45].mxu0 }
0x110f   :  { %v1865_v58 = vpop.f32.mrb[46].mxu0 }
0x1110   :  { %1876 = vrot.lane.b32.xlu1 %v1865_v58, %s3788_s22  ;;  %v3320_v42 = vpop.f32.mrb[47].mxu0 }
0x117a   :  { %v1873_v43 = vpop.permute.xlu1 %1872 }
0x117b   :  { %v1881_v45 = vsel %vm396_vm12, %v1620_v25, %v1873_v43  ;;  %v3539_v25 = vpack.c.bf16 %v1289_v41, %v1288_v24  ;;  %v1307_v24 = vld [vmem:[#allocation2 + $0x268] sm:$0xff] }
0x117c   :  { %3330 = vmatmul.mubr.msk.f32.vlgmr.msra.gmra.mrb[36].mxu1 %vm195_vm9, %v1881_v45 }
0x117d   :  { %3332 = vmatprep.mubr.msk.f32.mxu1 %vm3781_vm1, %v3782_v10  ;;  %3540 = vmatpush3.bf16.msra.mxu0 %v3539_v25  ;;  %v2036_v25 = vrot.slane %v4142_v4, %v4091_v2 }
0x117e   :  { %v1875_v46 = vpop.permute.xlu0 %1874  ;;  %3541 = vmatprep.subr.bf16.mxu0 %v3780_v1 }
0x117f   :  { %v1882_v49 = vsel %vm396_vm12, %v1625_v27, %v1875_v46  ;;  %v1291_v27 = vld [vmem:[#allocation2 + $0x1e8] sm:$0xff] }
0x1180   :  { %3333 = vmatmul.mubr.msk.f32.gmra.mrb[38].mxu1 %vm195_vm9, %v1882_v49  ;;  %v3542_v29 = vpack.c.bf16 %v1291_v27, %v1290_v26 }
0x1181   :  { %3335 = vmatprep.mubr.msk.f32.mxu1 %vm3781_vm1, %v3782_v10 }
0x1182   :  { %v1877_v51 = vpop.permute.xlu1 %1876  ;;  %3543 = vmatpush3.bf16.msra.mxu0 %v3542_v29 }
0x1183   :  { %v1883_v52 = vsel %vm396_vm12, %v1630_v30, %v1877_v51  ;;  %v1292_v30 = vld [vmem:[#allocation2 + $0x1f0] sm:$0xff]  ;;  %v2022_v51 = vrot.slane %v4142_v4, %v4056_v20 }
0x1184   :  { %3336 = vmatmul.mubr.msk.f32.gmra.mrb[40].mxu1 %vm195_vm9, %v1883_v52  ;;  %v3545_v36 = vpack.c.bf16 %v1293_v35, %v1292_v30 }
0x1185   :  { %3387 = vmatprep.mubr.msk.f32.mxu1 %vm3781_vm1, %v3782_v10 }
0x1186   :  { %3546 = vmatpush3.bf16.msra.mxu1 %v3545_v36 }
0x1187   :  { %3547 = vmatprep.subr.bf16.mxu1 %v3780_v1 }
0x124f   :  { %v1963_v44 = vpop.f32.mrb[36].mxu1 }
0x1250   :  { %v1964_v55 = vadd.f32 %v1963_v44, %v1887_v54  ;;  %v3331_v57 = vpop.f32.mrb[37].mxu1 }
0x1252   :  { %v1977_v60 = vadd.f32 %v1964_v55, %v4124_v59 }
0x1253   :  { %v1968_v61 = vpop.f32.mrb[38].mxu1 }
0x1254   :  { %v1969_v47 = vadd.f32 %v1968_v61, %v1887_v54  ;;  %v3334_v17 = vpop.f32.mrb[39].mxu1  ;;  %v1980_v0 = vsel %vm195_vm9, %v1977_v60, 0.0 }
0x1255   :  { %1981 = vadd.xlane.f32.xlu0 %v1980_v0 }
0x1256   :  { %v1978_v48 = vadd.f32 %v1969_v47, %v4130_v62 }
0x1257   :  { %v1973_v12 = vpop.f32.mrb[40].mxu1 }
0x1258   :  { %v1974_v5 = vadd.f32 %v1973_v12, %v1887_v54  ;;  %v3337_v6 = vpop.f32.mrb[41].mxu1  ;;  %v1983_v7 = vsel %vm195_vm9, %v1978_v48, 0.0  ;;  %v2029_v54 = vrot.slane %v4142_v4, %v4059_v23 }
0x1259   :  { %1984 = vadd.xlane.f32.xlu1 %v1983_v7  ;;  %v1294_v6 = vld [vmem:[#allocation2 + $0x200] sm:$0xff]  ;;  %v1295_v7 = vld [vmem:[#allocation2 + $0x208] sm:$0xff] }
0x125a   :  { %v1979_v14 = vadd.f32 %v1974_v5, %v4136_v3 }
0x125c   :  { %v1986_v8 = vsel %vm195_vm9, %v1979_v14, 0.0 }
0x125d   :  { %1987 = vadd.xlane.f32.xlu0 %v1986_v8  ;;  %v1296_v8 = vld [vmem:[#allocation2 + $0x210] sm:$0xff] }
0x12e2   :  { %v1982_v59 = vpop.xlane.xlu0 %1981 }
0x12e3   :  { %v1989_v31 = vmul.f32 0.03125, %v1982_v59  ;;  %v1297_v59 = vld [vmem:[#allocation2 + $0x218] sm:$0xff] }
0x12e5   :  { %v1992_v22 = vsub.f32 %v1977_v60, %v1989_v31  ;;  %v3551_v31 = vpack.c.bf16 %v1297_v59, %v1296_v8 }
0x12e6   :  { %v1985_v9 = vpop.xlane.xlu1 %1984 }
0x12e7   :  { %v1990_v11 = vmul.f32 0.03125, %v1985_v9  ;;  %v1995_v13 = vmul.f32 %v1992_v22, %v1992_v22  ;;  %v1299_v9 = vld [vmem:[#allocation2 + $0x228] sm:$0xff] }
0x12e9   :  { %v1993_v15 = vsub.f32 %v1978_v48, %v1990_v11  ;;  %v1998_v62 = vsel %vm195_vm9, %v1995_v13, 0.0  ;;  %v1300_v13 = vld [vmem:[#allocation2 + $0x230] sm:$0xff] }
0x12ea   :  { %1999 = vadd.xlane.f32.xlu0 %v1998_v62  ;;  %v1988_v28 = vpop.xlane.xlu0 %1987 }
0x12eb   :  { %v1991_v38 = vmul.f32 0.03125, %v1988_v28  ;;  %v1996_v16 = vmul.f32 %v1993_v15, %v1993_v15  ;;  %v1302_v28 = vld [vmem:[#allocation2 + $0x240] sm:$0xff] }
0x12ed   :  { %v1994_v18 = vsub.f32 %v1979_v14, %v1991_v38  ;;  %v2001_v19 = vsel %vm195_vm9, %v1996_v16, 0.0  ;;  %v3548_v14 = vpack.c.bf16 %v1295_v7, %v1294_v6  ;;  %v1303_v38 = vld [vmem:[#allocation2 + $0x248] sm:$0xff] }
0x12ee   :  { %2002 = vadd.xlane.f32.xlu1 %v2001_v19  ;;  %v3560_v16 = vpack.c.bf16 %v1303_v38, %v1302_v28  ;;  %v1305_v19 = vld [vmem:[#allocation2 + $0x258] sm:$0xff] }
0x12ef   :  { %v1997_v3 = vmul.f32 %v1994_v18, %v1994_v18  ;;  %3549 = vmatpush3.bf16.msra.mxu1 %v3548_v14 }
0x12f0   :  { %3550 = vmatprep.subr.bf16.mxu1 %v3780_v1 }
0x12f1   :  { %v2004_v21 = vsel %vm195_vm9, %v1997_v3, 0.0 }
0x12f2   :  { %2005 = vadd.xlane.f32.xlu0 %v2004_v21  ;;  %v1306_v21 = vld [vmem:[#allocation2 + $0x260] sm:$0xff] }
0x12f3   :  { %3552 = vmatpush3.bf16.msra.mxu1 %v3551_v31  ;;  %v3566_v41 = vpack.c.bf16 %v1307_v24, %v1306_v21 }
0x12f4   :  { %3553 = vmatprep.subr.bf16.mxu1 %v3780_v1 }
0x1377   :  { %v2000_v37 = vpop.xlane.xlu0 %1999 }
0x1378   :  { %v2007_v39 = vmul.f32 0.03125, %v2000_v37 }
0x137a   :  { %v2010_v56 = vadd.f32 1e-12, %v2007_v39 }
0x137b   :  { %v2003_v58 = vpop.xlane.xlu1 %2002 }
0x137c   :  { %3726 = vrsqrt.f32 %v2010_v56  ;;  %v2008_v42 = vmul.f32 0.03125, %v2003_v58 }
0x137e   :  { %v2011_v43 = vadd.f32 1e-12, %v2008_v42 }
0x137f   :  { %v2006_v45 = vpop.xlane.xlu0 %2005 }
0x1380   :  { %3728 = vrsqrt.f32 %v2011_v43  ;;  %v2009_v46 = vmul.f32 0.03125, %v2006_v45 }
0x1382   :  { %v2012_v49 = vadd.f32 1e-12, %v2009_v46 }
0x1384   :  { %3730 = vrsqrt.f32 %v2012_v49 }
0x1386   :  { %v3727_v52 = vpop.eup %3726 }
0x1387   :  { %v2016_v44 = vmul.f32 %v3727_v52, %v1992_v22  ;;  %v1298_v22 = vld [vmem:[#allocation2 + $0x220] sm:$0xff] }
0x1388   :  { %v3554_v11 = vpack.c.bf16 %v1299_v9, %v1298_v22 }
0x1389   :  { %v2023_v55 = vmul.f32 %v2022_v51, %v2016_v44 }
0x138a   :  { %v3729_v57 = vpop.eup %3728  ;;  %3555 = vmatpush3.bf16.msra.mxu1 %v3554_v11 }
0x138b   :  { %v4273_v60 = vadd.f32 %v2029_v54, %v2023_v55  ;;  %v2017_v61 = vmul.f32 %v3729_v57, %v1993_v15  ;;  %3556 = vmatprep.subr.bf16.mxu1 %v3780_v1  ;;  %v1301_v15 = vld [vmem:[#allocation2 + $0x238] sm:$0xff] }
0x138c   :  { %v3557_v62 = vpack.c.bf16 %v1301_v15, %v1300_v13  ;;  %v2156_v15 = vrot.slane %v4142_v4, %v1142_v53 }
0x138d   :  { %3347 = vmatmul.mubr.msk.f32.vlgmr.msra.gmra.mrb[48].mxu0 %vm195_vm9, %v4273_v60  ;;  %v2024_v47 = vmul.f32 %v2022_v51, %v2017_v61 }
0x138e   :  { %v3731_v17 = vpop.eup %3730  ;;  %3349 = vmatprep.mubr.msk.f32.mxu0 %vm3781_vm1, %v3782_v10  ;;  %3558 = vmatpush3.bf16.msra.mxu1 %v3557_v62 }
0x138f   :  { %v4279_v0 = vadd.f32 %v2029_v54, %v2024_v47  ;;  %v2018_v48 = vmul.f32 %v3731_v17, %v1994_v18  ;;  %3559 = vmatprep.subr.bf16.mxu1 %v3780_v1  ;;  %v1304_v18 = vld [vmem:[#allocation2 + $0x250] sm:$0xff] }
0x1390   :  { %v3563_v3 = vpack.c.bf16 %v1305_v19, %v1304_v18 }
0x1391   :  { %3350 = vmatmul.mubr.msk.f32.gmra.mrb[50].mxu0 %vm195_vm9, %v4279_v0  ;;  %v2025_v12 = vmul.f32 %v2022_v51, %v2018_v48 }
0x1392   :  { %3352 = vmatprep.mubr.msk.f32.mxu0 %vm3781_vm1, %v3782_v10  ;;  %3561 = vmatpush3.bf16.msra.mxu1 %v3560_v16 }
0x1393   :  { %v4285_v5 = vadd.f32 %v2029_v54, %v2025_v12  ;;  %3562 = vmatprep.subr.bf16.mxu1 %v3780_v1 }
0x1395   :  { %3353 = vmatmul.mubr.msk.f32.gmra.mrb[52].mxu0 %vm195_vm9, %v4285_v5 }
0x1396   :  { %3564 = vmatpush3.bf16.msra.mxu1 %v3563_v3 }
0x1397   :  { %3565 = vmatprep.subr.bf16.mxu1 %v3780_v1 }
0x139a   :  { %3567 = vmatpush3.bf16.msra.mxu1 %v3566_v41 }
0x139b   :  { %3587 = vmatprep.subr.bf16.mxu1 %v3780_v1 }
0x1460   :  { %v2112_v26 = vpop.f32.mrb[48].mxu0 }
0x1461   :  { %v2113_v27 = vadd.f32 %v2112_v26, %v2036_v25  ;;  %v3348_v29 = vpop.f32.mrb[49].mxu0 }
0x1463   :  { %v2126_v30 = vmul.f32 %v2113_v27, %v2113_v27 }
0x1464   :  { %v2117_v35 = vpop.f32.mrb[50].mxu0 }
0x1465   :  { %v2129_v36 = vmul.f32 %v2126_v30, %v2113_v27  ;;  %v2118_v37 = vadd.f32 %v2117_v35, %v2036_v25  ;;  %v3351_v39 = vpop.f32.mrb[51].mxu0 }
0x1467   :  { %v2132_v56 = vmul.f32 0.044715, %v2129_v36  ;;  %v2127_v58 = vmul.f32 %v2118_v37, %v2118_v37 }
0x1468   :  { %v2122_v42 = vpop.f32.mrb[52].mxu0 }
0x1469   :  { %v2135_v43 = vadd.f32 %v2132_v56, %v2113_v27  ;;  %v2130_v45 = vmul.f32 %v2127_v58, %v2118_v37  ;;  %v2123_v46 = vadd.f32 %v2122_v42, %v2036_v25  ;;  %v3354_v49 = vpop.f32.mrb[53].mxu0 }
0x146b   :  { %v2138_v51 = vmul.f32 0.7978846, %v2135_v43  ;;  %v2133_v52 = vmul.f32 0.044715, %v2130_v45  ;;  %v2128_v54 = vmul.f32 %v2123_v46, %v2123_v46 }
0x146d   :  { %3732 = vtanh.f32 %v2138_v51  ;;  %v2136_v44 = vadd.f32 %v2133_v52, %v2118_v37  ;;  %v2131_v55 = vmul.f32 %v2128_v54, %v2123_v46  ;;  %v2293_v51 = vld [vmem:[#allocation2 + $0x80] sm:$0xff] }
0x146e   :  { %3402 = vmatprep.mubr.msk.f32.mxu0 %vm489_vm14, %v2293_v51 }
0x146f   :  { %v2139_v57 = vmul.f32 0.7978846, %v2136_v44  ;;  %v2134_v61 = vmul.f32 0.044715, %v2131_v55 }
0x1471   :  { %v2137_v47 = vadd.f32 %v2134_v61, %v2123_v46  ;;  %3734 = vtanh.f32 %v2139_v57 }
0x1473   :  { %v2140_v17 = vmul.f32 0.7978846, %v2137_v47 }
0x1475   :  { %3736 = vtanh.f32 %v2140_v17 }
0x1477   :  { %v3733_v48 = vpop.eup %3732 }
0x1478   :  { %v2144_v12 = vadd.f32 1.0, %v3733_v48 }
0x147a   :  { %v2147_v6 = vmul.f32 0.5, %v2144_v12 }
0x147b   :  { %v3735_v7 = vpop.eup %3734 }
0x147c   :  { %v2150_v14 = vmul.f32 %v2147_v6, %v2113_v27  ;;  %v2145_v8 = vadd.f32 1.0, %v3735_v7  ;;  %v2282_v7 = vrot.slane %v4142_v4, %v1268_v40  ;;  %v2459_v40 = vld [vmem:[#allocation2 + $0x288] sm:$0xff] }
0x147e   :  { %3388 = vmatmul.mubr.f32.vlgmr.msra.gmra.mrb[42].mxu1 %v2150_v14  ;;  %v2148_v59 = vmul.f32 0.5, %v2145_v8 }
0x147f   :  { %v3737_v31 = vpop.eup %3736  ;;  %3390 = vmatprep.mubr.msk.f32.mxu1 %vm3781_vm1, %v3782_v10 }
0x1480   :  { %v2151_v22 = vmul.f32 %v2148_v59, %v2118_v37  ;;  %v2146_v9 = vadd.f32 1.0, %v3737_v31  ;;  %v2289_v31 = vrot.slane %v4142_v4, %v1275_v50  ;;  %v2378_v50 = vld [vmem:[%s4367_s3] sm:$0x3]  ;;  %v2461_v4 = vld [vmem:[#allocation2 + $0x298] sm:$0xff]  ;;  %s3789_s3 = smov 32  }
0x1482   :  { %3391 = vmatmul.mubr.f32.gmra.mrb[44].mxu1 %v2151_v22  ;;  %v2149_v11 = vmul.f32 0.5, %v2146_v9 }
0x1483   :  { %3393 = vmatprep.mubr.msk.f32.mxu1 %vm3781_vm1, %v3782_v10 }
0x1484   :  { %v2152_v13 = vmul.f32 %v2149_v11, %v2123_v46 }
0x1486   :  { %3394 = vmatmul.mubr.f32.gmra.mrb[46].mxu1 %v2152_v13 }
0x1487   :  { %3434 = vmatprep.mubr.msk.f32.mxu1 %vm3781_vm1, %v3782_v10 }
0x1551   :  { %v2223_v62 = vpop.f32.mrb[42].mxu1 }
0x1552   :  { %v2224_v28 = vadd.f32 %v2223_v62, %v2156_v15  ;;  %v3389_v38 = vpop.f32.mrb[43].mxu1 }
0x1554   :  { %v2237_v16 = vadd.f32 %v2224_v28, %v4273_v60 }
0x1555   :  { %v2228_v18 = vpop.f32.mrb[44].mxu1 }
0x1556   :  { %v2229_v19 = vadd.f32 %v2228_v18, %v2156_v15  ;;  %v3392_v3 = vpop.f32.mrb[45].mxu1  ;;  %v2240_v21 = vsel %vm195_vm9, %v2237_v16, 0.0  ;;  %v2381_v18 = vld [vmem:[#allocation2 + $0x280] sm:$0xff] }
0x1557   :  { %2241 = vadd.xlane.f32.xlu1 %v2240_v21  ;;  %v2294_v3 = vld [vmem:[#allocation2 + $0x88] sm:$0xff] }
0x1558   :  { %v2238_v24 = vadd.f32 %v2229_v19, %v4279_v0  ;;  %v2460_v19 = vld [vmem:[#allocation2 + $0x290] sm:$0xff] }
0x1559   :  { %v2233_v41 = vpop.f32.mrb[46].mxu1  ;;  %v3575_v32 = vpack.c.bf16 %v2460_v19, %v2459_v40 }
0x155a   :  { %v2234_v25 = vadd.f32 %v2233_v41, %v2156_v15  ;;  %v3395_v26 = vpop.f32.mrb[47].mxu1  ;;  %v2243_v27 = vsel %vm195_vm9, %v2238_v24, 0.0 }
0x155b   :  { %2244 = vadd.xlane.f32.xlu0 %v2243_v27  ;;  %v2296_v26 = vld [vmem:[#allocation2 + $0x98] sm:$0xff] }
0x155c   :  { %v2239_v53 = vadd.f32 %v2234_v25, %v4285_v5  ;;  %v2295_v25 = vld [vmem:[#allocation2 + $0x90] sm:$0xff] }
0x155e   :  { %v2246_v29 = vsel %vm195_vm9, %v2239_v53, 0.0 }
0x155f   :  { %2247 = vadd.xlane.f32.xlu1 %v2246_v29 }
0x15e4   :  { %v2242_v60 = vpop.xlane.xlu1 %2241 }
0x15e5   :  { %v2249_v30 = vmul.f32 0.03125, %v2242_v60 }
0x15e7   :  { %v2252_v35 = vsub.f32 %v2237_v16, %v2249_v30  ;;  %v2380_v16 = vld [vmem:[#allocation2 + $0x278] sm:$0xff] }
0x15e8   :  { %v2245_v36 = vpop.xlane.xlu0 %2244  ;;  %v3573_v21 = vpack.c.bf16 %v2381_v18, %v2380_v16 }
0x15e9   :  { %v2250_v37 = vmul.f32 0.03125, %v2245_v36  ;;  %v2255_v39 = vmul.f32 %v2252_v35, %v2252_v35  ;;  %v4336_v36 = vld [vmem:[#allocation2 + $0x2b8] sm:$0xff] }
0x15ea   :  { %v2818_v16 = vrot.slane %v4336_v36, %v4091_v2 }
0x15eb   :  { %v2253_v56 = vsub.f32 %v2238_v24, %v2250_v37  ;;  %v2258_v0 = vsel %vm195_vm9, %v2255_v39, 0.0  ;;  %v2462_v24 = vld [vmem:[#allocation2 + $0x2a0] sm:$0xff]  ;;  %v2466_v37 = vrot.slane %v4336_v36, %v3875_v34 }
0x15ec   :  { %2259 = vadd.xlane.f32.xlu0 %v2258_v0  ;;  %v2248_v58 = vpop.xlane.xlu1 %2247  ;;  %v3579_v41 = vpack.c.bf16 %v2462_v24, %v2461_v4  ;;  %v2548_v34 = vld [vmem:[#allocation2 + $0xa0] sm:$0xff] }
0x15ed   :  { %v2251_v42 = vmul.f32 0.03125, %v2248_v58  ;;  %v2256_v43 = vmul.f32 %v2253_v56, %v2253_v56 }
0x15ef   :  { %v2254_v45 = vsub.f32 %v2239_v53, %v2251_v42  ;;  %v2261_v46 = vsel %vm195_vm9, %v2256_v43, 0.0 }
0x15f0   :  { %2262 = vadd.xlane.f32.xlu1 %v2261_v46 }
0x15f1   :  { %v2257_v5 = vmul.f32 %v2254_v45, %v2254_v45 }
0x15f3   :  { %v2264_v49 = vsel %vm195_vm9, %v2257_v5, 0.0 }
0x15f4   :  { %2265 = vadd.xlane.f32.xlu0 %v2264_v49 }
0x1679   :  { %v2260_v52 = vpop.xlane.xlu0 %2259 }
0x167a   :  { %v2267_v54 = vmul.f32 0.03125, %v2260_v52 }
0x167c   :  { %v2270_v44 = vadd.f32 1e-12, %v2267_v54 }
0x167d   :  { %v2263_v55 = vpop.xlane.xlu1 %2262 }
0x167e   :  { %3738 = vrsqrt.f32 %v2270_v44  ;;  %v2268_v57 = vmul.f32 0.03125, %v2263_v55 }
0x1680   :  { %v2271_v61 = vadd.f32 1e-12, %v2268_v57 }
0x1681   :  { %v2266_v47 = vpop.xlane.xlu0 %2265 }
0x1682   :  { %3740 = vrsqrt.f32 %v2271_v61  ;;  %v2269_v17 = vmul.f32 0.03125, %v2266_v47  ;;  %v2719_v47 = vld [vmem:[#allocation2 + $0x2a8] sm:$0xff] }
0x1684   :  { %v2272_v48 = vadd.f32 1e-12, %v2269_v17  ;;  %v2720_v17 = vld [vmem:[#allocation2 + $0x2b0] sm:$0xff] }
0x1686   :  { %3742 = vrsqrt.f32 %v2272_v48  ;;  %v3591_v48 = vpack.c.bf16 %v2720_v17, %v2719_v47 }
0x1688   :  { %v3739_v12 = vpop.eup %3738 }
0x1689   :  { %v2276_v6 = vmul.f32 %v3739_v12, %v2252_v35 }
0x168b   :  { %v2283_v59 = vmul.f32 %v2282_v7, %v2276_v6 }
0x168c   :  { %v3741_v14 = vpop.eup %3740 }
0x168d   :  { %v2277_v8 = vmul.f32 %v3741_v14, %v2253_v56  ;;  %v2290_v11 = vadd.f32 %v2289_v31, %v2283_v59  ;;  %v2724_v59 = vrot.slane %v4336_v36, %v4056_v20 }
0x168f   :  { %v2284_v22 = vmul.f32 %v2282_v7, %v2277_v8 }
0x1690   :  { %v3743_v9 = vpop.eup %3742 }
0x1691   :  { %v2291_v13 = vadd.f32 %v2289_v31, %v2284_v22  ;;  %v2278_v15 = vmul.f32 %v3743_v9, %v2254_v45  ;;  %v2385_v45 = vrot.slane %v4336_v36, %v3872_v33 }
0x1693   :  { %v3568_v62 = vpack.c.bf16 %v2291_v13, %v2290_v11  ;;  %v2285_v28 = vmul.f32 %v2282_v7, %v2278_v15  ;;  %v2809_v11 = vrot.slane %v4336_v36, %v4059_v23 }
0x1695   :  { %3569 = vmatprep.subr.bf16.mxu0 %v3568_v62  ;;  %v2292_v38 = vadd.f32 %v2289_v31, %v2285_v28 }
0x1696   :  { %3571 = vmatpush3.bf16.msra.mxu0 %v3568_v62 }
0x1697   :  { %3400 = vmatprep.subr.mxu0 %v2292_v38 }
0x169a   :  { %3401 = vmatpush3.msra.mxu0 %v2292_v38 }
0x169b   :  { %3403 = vmatmul.mubr.msk.f32.vlgmr.msra.gmra.mrb[54].mxu0 %vm489_vm14, %v2294_v3  ;;  %3572 = vmatprep.subr.bf16.mxu0 %v3780_v1 }
0x169c   :  { %3574 = vmatpush3.bf16.msra.mxu0 %v3573_v21  ;;  %3409 = vmatprep.mubr.msk.f32.mxu0 %vm3781_vm1, %v3782_v10 }
0x169d   :  { %3576 = vmatprep.subr.bf16.mxu0 %v3575_v32 }
0x169f   :  { %3410 = vmatmul.mubr.msk.f32.vlgmr.msra.gmra.mrb[56].mxu0 %vm396_vm12, %v2378_v50 }
0x16a0   :  { %3578 = vmatpush3.bf16.msra.mxu0 %v3575_v32 }
0x16a1   :  { %3580 = vmatprep.subr.bf16.mxu0 %v3579_v41 }
0x16a4   :  { %3582 = vmatpush3.bf16.msra.mxu0 %v3579_v41 }
0x16a5   :  { %3583 = vmatprep.subr.bf16.mxu0 %v3780_v1 }
0x176e   :  { %v3404_v27 = vpop.f32.mrb[54].mxu0 }
0x176f   :  { %v2369_v53 = vpop.f32.mrb[55].mxu0  ;;  %v2375_v60 = vadd.f32 %v3404_v27, %v2296_v26 }
0x1770   :  { %v2370_v29 = vadd.f32 %v2369_v53, %v2295_v25 }
0x1772   :  { %3420 = vmatprep.mubr.msk.f32.mxu0 %vm195_vm9, %v2370_v29  ;;  %v2455_v30 = vpop.f32.mrb[56].mxu0 }
0x1773   :  { %3421 = vmatmul.mubr.msk.f32.vlgmr.msra.gmra.mrb[58].mxu0 %vm195_vm9, %v2375_v60  ;;  %v3411_v35 = vpop.f32.mrb[57].mxu0  ;;  %v2456_v46 = vadd.f32 %v2455_v30, %v2385_v45 }
0x1774   :  { %3427 = vmatprep.mubr.msk.f32.mxu0 %vm3781_vm1, %v3782_v10 }
0x1846   :  { %v3422_v39 = vpop.f32.mrb[58].mxu0 }
0x1847   :  { %v2545_v56 = vadd.f32 %v3422_v39, %v2466_v37  ;;  %v2539_v0 = vpop.f32.mrb[59].mxu0 }
0x1848   :  { %v2540_v58 = vadd.f32 %v2539_v0, %v2466_v37 }
0x184a   :  { %v3649_v42 = vpack.i.bf16 %v2545_v56, %v2540_v58  ;;  %v3584_v43 = vpack.c.bf16 %v2545_v56, %v2540_v58 }
0x184c   :  { %3586 = vmatpush3.bf16.xpose.msk.msra.mxu0 %vm3929_vm13, %v3584_v43 }
0x184d   :  { %3590 = vmatprep.subr.bf16.mxu0 %v3780_v1 }
0x1853   :  { %3428 = vmatmul.mubr.msk.f32.vlgmr.msra.gmra.mrb[60].mxu0 %vm396_vm12, %v2456_v46 }
0x1854   :  { %3441 = vmatprep.mubr.msk.f32.mxu0 %vm3781_vm1, %v3782_v10  ;;  %3592 = vmatpush3.bf16.msra.mxu0 %v3591_v48  ;;  %vm2826_vm1 = vcmask 1024  }
0x1926   :  { %v2624_v5 = vpop.f32.mrb[60].mxu0 }
0x1927   :  { %v2625_v49 = vadd.f32 %v2624_v5, %v2548_v34  ;;  %v3429_v51 = vpop.f32.mrb[61].mxu0 }
0x1929   :  { %v2629_v52 = vsel %vm2628_vm15, %v2625_v49, -inf }
0x192a   :  { %2630 = vmax.xlane.f32.xlu1 %v2629_v52 }
0x193b   :  { %3650 = vrot.lane.b32.xlu1 %v3649_v42, %s3785_s18 }
0x19b7   :  { %v2631_v63 = vpop.xlane.xlu1 %2630 }
0x19b8   :  { %v2632_v33 = vsub.f32 %v2625_v49, %v2631_v63 }
0x19ba   :  { %v2633_v54 = vmul.f32 1.442695, %v2632_v33 }
0x19bb   :  { %v3651_v1 = vpop.permute.xlu1 %3650 }
0x19bc   :  { %3744 = vpow2.f32 %v2633_v54  ;;  %v3653_v44 = vunpack.i.h.bf16 %v3651_v1  ;;  %v3652_v55 = vunpack.i.l.bf16 %v3651_v1 }
0x19be   :  { %v3588_v57 = vpack.c.bf16 %v3653_v44, %v3652_v55 }
0x19c0   :  { %3589 = vmatpush3.bf16.msra.mxu1 %v3588_v57 }
0x19c6   :  { %v3745_v10 = vpop.eup %3744 }
0x19c7   :  { %v2635_v61 = vsel %vm2628_vm15, %v3745_v10, 0.0 }
0x19c8   :  { %2636 = vadd.xlane.f32.xlu0 %v2635_v61 }
0x19de   :  { %2798 = vrot.lane.b32.xlu0 %v2456_v46, %s3785_s18 }
0x1a55   :  { %v2637_v12 = vpop.xlane.xlu0 %2636 }
0x1a56   :  { %3746 = vrcp.f32 %v2637_v12 }
0x1a59   :  { %v2799_v13 = vpop.permute.xlu0 %2798 }
0x1a60   :  { %v3747_v6 = vpop.eup %3746 }
0x1a61   :  { %v2639_v7 = vmul.f32 %v3747_v6, %v3745_v10 }
0x1a63   :  { %3435 = vmatmul.mubr.msk.f32.vlgmr.msra.gmra.mrb[48].mxu1 %vm396_vm12, %v2639_v7 }
0x1b36   :  { %v2715_v14 = vpop.f32.mrb[48].mxu1 }
0x1b37   :  { %v3436_v8 = vpop.f32.mrb[49].mxu1  ;;  %3442 = vmatmul.mubr.msk.f32.vlgmr.msra.gmra.mrb[62].mxu0 %vm396_vm12, %v2715_v14 }
0x1c0a   :  { %v2794_v31 = vpop.f32.mrb[62].mxu0 }
0x1c0b   :  { %v2795_v22 = vadd.f32 %v2794_v31, %v2724_v59  ;;  %v3443_v9 = vpop.f32.mrb[63].mxu0 }
0x1c0d   :  { %2802 = vrot.lane.b32.xlu1 %v2795_v22, %s3789_s3 }
0x1c7f   :  { %v2803_v15 = vpop.permute.xlu1 %2802 }
0x1c80   :  { %v2805_v62 = vsel %vm195_vm9, %v2799_v13, %v2803_v15 }
0x1c81   :  { %v2810_v28 = vmul.f32 %v2809_v11, %v2805_v62 }
0x1c83   :  { %v2812_v38 = vsel %vm2811_vm0, %v2810_v28, 0.0 }
0x1c84   :  { %2813 = vadd.xlane.f32.xlu1 %v2812_v38 }
0x1d11   :  { %v2814_v20 = vpop.xlane.xlu1 %2813 }
0x1d12   :  { %v2819_v18 = vadd.f32 %v2818_v16, %v2814_v20 }
0x1d14   :  { %v2904_v40 = vmul.f32 -1.442695, %v2819_v18 }
0x1d16   :  { %3748 = vpow2.f32 %v2904_v40 }
0x1d20   :  { %v3749_v19 = vpop.eup %3748 }
0x1d21   :  { %v2823_v3 = vadd.f32 1.0, %v3749_v19 }
0x1d23   :  { %3750 = vrcp.f32 %v2823_v3 }
0x1d2d   :  { %v3751_v23 = vpop.eup %3750 }
0x1d2e   :  { %2827 = vst.msk [vmem:[%s4369_s5] sm:$0x3] %vm2826_vm1, %v3751_v23 }
0x1d2f   :  { %2832 = vsyncpa [#allocation3], 1 }

</bundles_post_ra>
